<compile_context>
chip_gen: v6e
topology: v6e:2x2x1
jax: 0.10.0
libtpu: 0.0.40
codegen_flags: <defaults>
</compile_context>

<pallas_src>
import jax
import jax.numpy as jnp
from jax.experimental import pallas as pl
from jax.experimental.pallas import tpu as pltpu

_LAYERS = ("enc_1", "enc_2", "enc_3", "z_layer",
           "dec_1", "dec_2", "dec_3", "x_bar_layer")
_RELU = (True, True, True, False, True, True, True, False)
_Z_LAYER_IDX = 3  # index of z_layer in _LAYERS


def _round_up(x, m):
    return (x + m - 1) // m * m


def _ae_fused_kernel(*refs):
    """refs = (x_ref, w1, b1, ..., w8, b8, xbar_ref, z_ref)."""
    n_layers = (len(refs) - 3) // 2
    x_ref = refs[0]
    wb = refs[1:1 + 2 * n_layers]
    xbar_ref, z_ref = refs[-2], refs[-1]

    h = x_ref[...]
    for li in range(n_layers):
        w_ref, b_ref = wb[2 * li], wb[2 * li + 1]
        y = jnp.dot(h.astype(w_ref.dtype), w_ref[...],
                    preferred_element_type=jnp.float32)
        y = y + b_ref[...].astype(jnp.float32)          # (1, N) broadcast
        if _RELU[li]:
            y = jnp.maximum(y, 0.0)
        if li == _Z_LAYER_IDX:
            # Early z writeback: don't carry it across the decoder matmuls.
            z_ref[...] = y.astype(z_ref.dtype)
        h = y
    xbar_ref[...] = h.astype(xbar_ref.dtype)


def _vmem_capacity_bytes():
    try:
        return int(pltpu.get_tpu_info().vmem_capacity_bytes)
    except Exception:
        return 64 << 20        # conservative fallback (v7x per-TensorCore)


def _choose_tile(M, row_bytes, resident_bytes, budget_bytes):
    cands = (2048, 1024, 512, 256, 128, 64, 32, 16, 8)
    fit = [c for c in cands if resident_bytes + c * row_bytes <= budget_bytes]
    tm_fit = fit[0] if fit else 8
    viable = [c for c in cands if c <= tm_fit]
    # Largest fitting tile whose batch-padding waste stays <= 12.5%.
    for c in viable:
        if (_round_up(M, c) - M) * 8 <= M:
            return c
    # Otherwise minimize padded rows; tie-break on larger tile.
    return min(viable, key=lambda c: (_round_up(M, c), -c))


def ae_forward(params, x, *, compute_dtype=jnp.bfloat16,
               vmem_budget_bytes=None, return_padded=False):
    """Mirrors AE.forward: returns (x_bar, z).

    params[name] = (w_t, b) with w_t shaped (in_features, out_features).
    compute_dtype=None keeps the matmuls in f32 (bit-tight vs. the reference);
    the default bf16 uses the MXU's native path with f32 accumulation.
    """
    M, n_input = x.shape
    out_dtype = x.dtype
    n_z = params["z_layer"][0].shape[1]

    phys_vmem = _vmem_capacity_bytes()
    if vmem_budget_bytes is None:
        vmem_budget_bytes = int(phys_vmem * 0.65)

    # ---- pad weights/biases to lane-dense (multiple-of-128) shapes ----------
    padded, widths_p, kdims_p = [], [], []
    for name in _LAYERS:
        w_t, b = params[name]
        k, n = w_t.shape
        kp, np_ = _round_up(k, 128), _round_up(n, 128)
        if compute_dtype is not None:
            w_t = w_t.astype(compute_dtype)          # bias stays f32 (epilogue)
        wp = jnp.pad(w_t, ((0, kp - k), (0, np_ - n)))
        bp = jnp.pad(b.astype(jnp.float32).reshape(1, n), ((0, 0), (0, np_ - n)))
        padded.append((wp, bp))
        widths_p.append(np_)
        kdims_p.append(kp)

    in_p = _round_up(n_input, 128)
    z_p = widths_p[_Z_LAYER_IDX]
    xbar_p = widths_p[-1]

    # ---- VMEM footprint & batch-tile choice ---------------------------------
    param_bytes = sum(w.size * w.dtype.itemsize + b.size * b.dtype.itemsize
                      for (w, b) in padded)
    x_isz = jnp.dtype(x.dtype).itemsize
    o_isz = jnp.dtype(out_dtype).itemsize
    c_isz = jnp.dtype(compute_dtype).itemsize if compute_dtype is not None else 4

    # Peak live activations per batch row: widest layer's in+out in f32, plus
    # the compute-dtype cast copy of the matmul LHS.
    max_live = max(kp + np_ for kp, np_ in zip(kdims_p, widths_p))
    max_kp = max(kdims_p)
    row_bytes = (4 * max_live + c_isz * max_kp
                 + 2 * x_isz * in_p                   # double-buffered x block
                 + 2 * o_isz * (xbar_p + z_p))        # double-buffered out blocks
    row_bytes = int(row_bytes * 1.25)                 # compiler-temp headroom

    tm = _choose_tile(M, row_bytes, param_bytes, vmem_budget_bytes)
    Mp = _round_up(M, tm)
    x_p = jnp.pad(x, ((0, Mp - M), (0, in_p - n_input)))

    # ---- cost estimate for XLA's scheduler -----------------------------------
    flops = 2 * Mp * sum(kp * np_ for kp, np_ in zip(kdims_p, widths_p))
    bytes_accessed = (x_p.size * x_isz + param_bytes
                      + Mp * (xbar_p + z_p) * o_isz)
    cost = pl.CostEstimate(flops=flops, transcendentals=0,
                           bytes_accessed=bytes_accessed)

    out_shapes = (jax.ShapeDtypeStruct((Mp, xbar_p), out_dtype),
                  jax.ShapeDtypeStruct((Mp, z_p), out_dtype))
    out_specs = [pl.BlockSpec((tm, xbar_p), lambda i: (i, 0)),
                 pl.BlockSpec((tm, z_p), lambda i: (i, 0))]

    def _call(single_buffer_weights):
        mode = pl.Buffered(1) if single_buffer_weights else None
        flat = [x_p]
        in_specs = [pl.BlockSpec((tm, in_p), lambda i: (i, 0))]
        for (wp, bp) in padded:
            flat += [wp, bp]
            if mode is None:
                in_specs += [pl.BlockSpec(wp.shape, lambda i: (0, 0)),
                             pl.BlockSpec(bp.shape, lambda i: (0, 0))]
            else:
                in_specs += [
                    pl.BlockSpec(wp.shape, lambda i: (0, 0), pipeline_mode=mode),
                    pl.BlockSpec(bp.shape, lambda i: (0, 0), pipeline_mode=mode)]
        resident = param_bytes if single_buffer_weights else 2 * param_bytes
        vmem_need = resident + tm * row_bytes
        # Always request a limit (v5e's scoped default is only 16 MiB); keep a
        # safety margin below physical capacity (v7x is only 64 MiB/TC).
        vmem_limit = int(min(max(vmem_need + (8 << 20), 32 << 20),
                             max(phys_vmem - (8 << 20), 32 << 20)))
        return pl.pallas_call(
            _ae_fused_kernel,
            out_shape=out_shapes,
            grid_spec=pltpu.PrefetchScalarGridSpec(
                num_scalar_prefetch=0,
                grid=(Mp // tm,),
                in_specs=in_specs,
                out_specs=out_specs,
            ),
            compiler_params=pltpu.CompilerParams(
                dimension_semantics=("parallel",),
                vmem_limit_bytes=vmem_limit,
            ),
            cost_estimate=cost,
        )(*flat)

    try:
        x_bar_pad, z_pad = _call(True)        # single-buffered resident weights
    except Exception:
        x_bar_pad, z_pad = _call(False)       # fallback: default double-buffer

    if return_padded:
        # Caller tolerates padded outputs -> avoids a strided column-slice copy.
        return x_bar_pad, z_pad
    return x_bar_pad[:M, :n_input], z_pad[:M, :n_z]


def init_ae_params(key, n_enc_1, n_enc_2, n_enc_3, n_dec_1, n_dec_2, n_dec_3,
                   n_input, n_z, dtype=jnp.float32):
    """Deterministic (Kaiming-uniform-ish) init; weights stored as (in, out)."""
    dims = [
        ("enc_1", n_input, n_enc_1),
        ("enc_2", n_enc_1, n_enc_2),
        ("enc_3", n_enc_2, n_enc_3),
        ("z_layer", n_enc_3, n_z),
        ("dec_1", n_z, n_dec_1),
        ("dec_2", n_dec_1, n_dec_2),
        ("dec_3", n_dec_2, n_dec_3),
        ("x_bar_layer", n_dec_3, n_input),
    ]
    params = {}
    for name, fan_in, fan_out in dims:
        key, kw, kb = jax.random.split(key, 3)
        bound = 1.0 / jnp.sqrt(jnp.float32(fan_in))
        w_t = jax.random.uniform(kw, (fan_in, fan_out), dtype, -bound, bound)
        b = jax.random.uniform(kb, (fan_out,), dtype, -bound, bound)
        params[name] = (w_t, b)
    return params


def ae_forward_ref(params, x):
    """Pure-JAX reference for correctness checking."""
    def lin(h, name, relu):
        w_t, b = params[name]
        y = h @ w_t + b
        return jnp.maximum(y, 0.0) if relu else y
    h = lin(x, "enc_1", True)
    h = lin(h, "enc_2", True)
    h = lin(h, "enc_3", True)
    z = lin(h, "z_layer", False)
    h = lin(z, "dec_1", True)
    h = lin(h, "dec_2", True)
    h = lin(h, "dec_3", True)
    x_bar = lin(h, "x_bar_layer", False)
    return x_bar, z


if __name__ == "__main__":
    # Small synthetic sizes consistent with the module's constructor signature.
    n_input, n_z = 32, 16
    n_enc_1, n_enc_2, n_enc_3 = 64, 64, 32
    n_dec_1, n_dec_2, n_dec_3 = 32, 64, 64
    batch = 16

    key = jax.random.PRNGKey(0)
    key, kx = jax.random.split(key)
    x = jax.random.normal(kx, (batch, n_input), jnp.float32)

    params = init_ae_params(key, n_enc_1, n_enc_2, n_enc_3,
                            n_dec_1, n_dec_2, n_dec_3, n_input, n_z)

    x_bar_ref, z_ref = ae_forward_ref(params, x)

    # 1) f32 compute path: bit-tight vs. the pure-JAX reference.
    x_bar32, z32 = ae_forward(params, x, compute_dtype=None)
    x_bar32, z32 = jax.block_until_ready((x_bar32, z32))
    assert x_bar32.shape == (batch, n_input)
    assert z32.shape == (batch, n_z)
    assert jnp.allclose(x_bar32, x_bar_ref, atol=2e-5, rtol=2e-5)
    assert jnp.allclose(z32, z_ref, atol=2e-5, rtol=2e-5)

    # 2) Default bf16 MXU path (f32 accumulation): looser tolerance vs f32 ref.
    x_bar_bf, z_bf = ae_forward(params, x)
    x_bar_bf, z_bf = jax.block_until_ready((x_bar_bf, z_bf))
    assert x_bar_bf.shape == (batch, n_input)
    assert z_bf.shape == (batch, n_z)
    assert jnp.allclose(x_bar_bf, x_bar_ref, atol=1e-1, rtol=1e-1)
    assert jnp.allclose(z_bf, z_ref, atol=1e-1, rtol=1e-1)

    print("KERNEL_OK")
</pallas_src>

<mosaic_0001>
module attributes {stable_mosaic.version = 11 : i64} {
  func.func @_ae_fused_kernel(%arg0: i32, %arg1: memref<16x128xf32, #tpu.memory_space<vmem>>, %arg2: memref<128x128xf32, #tpu.memory_space<vmem>>, %arg3: memref<1x128xf32, #tpu.memory_space<vmem>>, %arg4: memref<128x128xf32, #tpu.memory_space<vmem>>, %arg5: memref<1x128xf32, #tpu.memory_space<vmem>>, %arg6: memref<128x128xf32, #tpu.memory_space<vmem>>, %arg7: memref<1x128xf32, #tpu.memory_space<vmem>>, %arg8: memref<128x128xf32, #tpu.memory_space<vmem>>, %arg9: memref<1x128xf32, #tpu.memory_space<vmem>>, %arg10: memref<128x128xf32, #tpu.memory_space<vmem>>, %arg11: memref<1x128xf32, #tpu.memory_space<vmem>>, %arg12: memref<128x128xf32, #tpu.memory_space<vmem>>, %arg13: memref<1x128xf32, #tpu.memory_space<vmem>>, %arg14: memref<128x128xf32, #tpu.memory_space<vmem>>, %arg15: memref<1x128xf32, #tpu.memory_space<vmem>>, %arg16: memref<128x128xf32, #tpu.memory_space<vmem>>, %arg17: memref<1x128xf32, #tpu.memory_space<vmem>>, %arg18: memref<16x128xf32, #tpu.memory_space<vmem>>, %arg19: memref<16x128xf32, #tpu.memory_space<vmem>>) attributes {dimension_semantics = [#tpu.dimension_semantics<parallel>], iteration_bounds = array<i64: 1>, scalar_prefetch = 0 : i64, scratch_operands = 0 : i64, tpu.core_type = #tpu.core_type<tc>, window_params = [{transform_indices = @transform_0, window_bounds = array<i64: 16, 128>}, {pipeline_mode = #tpu.pipeline_mode<synchronous>, transform_indices = @transform_1, window_bounds = array<i64: 128, 128>}, {pipeline_mode = #tpu.pipeline_mode<synchronous>, transform_indices = @transform_2, window_bounds = array<i64: 1, 128>}, {pipeline_mode = #tpu.pipeline_mode<synchronous>, transform_indices = @transform_3, window_bounds = array<i64: 128, 128>}, {pipeline_mode = #tpu.pipeline_mode<synchronous>, transform_indices = @transform_4, window_bounds = array<i64: 1, 128>}, {pipeline_mode = #tpu.pipeline_mode<synchronous>, transform_indices = @transform_5, window_bounds = array<i64: 128, 128>}, {pipeline_mode = #tpu.pipeline_mode<synchronous>, transform_indices = @transform_6, window_bounds = array<i64: 1, 128>}, {pipeline_mode = #tpu.pipeline_mode<synchronous>, transform_indices = @transform_7, window_bounds = array<i64: 128, 128>}, {pipeline_mode = #tpu.pipeline_mode<synchronous>, transform_indices = @transform_8, window_bounds = array<i64: 1, 128>}, {pipeline_mode = #tpu.pipeline_mode<synchronous>, transform_indices = @transform_9, window_bounds = array<i64: 128, 128>}, {pipeline_mode = #tpu.pipeline_mode<synchronous>, transform_indices = @transform_10, window_bounds = array<i64: 1, 128>}, {pipeline_mode = #tpu.pipeline_mode<synchronous>, transform_indices = @transform_11, window_bounds = array<i64: 128, 128>}, {pipeline_mode = #tpu.pipeline_mode<synchronous>, transform_indices = @transform_12, window_bounds = array<i64: 1, 128>}, {pipeline_mode = #tpu.pipeline_mode<synchronous>, transform_indices = @transform_13, window_bounds = array<i64: 128, 128>}, {pipeline_mode = #tpu.pipeline_mode<synchronous>, transform_indices = @transform_14, window_bounds = array<i64: 1, 128>}, {pipeline_mode = #tpu.pipeline_mode<synchronous>, transform_indices = @transform_15, window_bounds = array<i64: 128, 128>}, {pipeline_mode = #tpu.pipeline_mode<synchronous>, transform_indices = @transform_16, window_bounds = array<i64: 1, 128>}, {transform_indices = @transform_17, window_bounds = array<i64: 16, 128>}, {transform_indices = @transform_18, window_bounds = array<i64: 16, 128>}]} {
    %c0 = arith.constant 0 : index
    %c0_0 = arith.constant 0 : index
    %0 = vector.load %arg1[%c0, %c0_0] : memref<16x128xf32, #tpu.memory_space<vmem>>, vector<16x128xf32>
    %c0_1 = arith.constant 0 : index
    %c0_2 = arith.constant 0 : index
    %1 = vector.load %arg2[%c0_1, %c0_2] : memref<128x128xf32, #tpu.memory_space<vmem>>, vector<128x128xf32>
    %cst = arith.constant dense<0.000000e+00> : vector<16x128xf32>
    %2 = tpu.matmul %0, %1, %cst {dimension_numbers = #tpu.dot_dimension_numbers<[1], [0], [0], [1], [0, 0, 1, 1], [], []>} : vector<16x128xf32>, vector<128x128xf32>, vector<16x128xf32> -> vector<16x128xf32>
    %c0_3 = arith.constant 0 : index
    %c0_4 = arith.constant 0 : index
    %3 = vector.load %arg3[%c0_3, %c0_4] : memref<1x128xf32, #tpu.memory_space<vmem>>, vector<1x128xf32>
    %4 = vector.broadcast %3 : vector<1x128xf32> to vector<16x128xf32>
    %5 = arith.addf %2, %4 : vector<16x128xf32>
    %cst_5 = arith.constant 0.000000e+00 : f32
    %6 = vector.broadcast %cst_5 : f32 to vector<16x128xf32>
    %7 = arith.maximumf %5, %6 : vector<16x128xf32>
    %c0_6 = arith.constant 0 : index
    %c0_7 = arith.constant 0 : index
    %8 = vector.load %arg4[%c0_6, %c0_7] : memref<128x128xf32, #tpu.memory_space<vmem>>, vector<128x128xf32>
    %cst_8 = arith.constant dense<0.000000e+00> : vector<16x128xf32>
    %9 = tpu.matmul %7, %8, %cst_8 {dimension_numbers = #tpu.dot_dimension_numbers<[1], [0], [0], [1], [0, 0, 1, 1], [], []>} : vector<16x128xf32>, vector<128x128xf32>, vector<16x128xf32> -> vector<16x128xf32>
    %c0_9 = arith.constant 0 : index
    %c0_10 = arith.constant 0 : index
    %10 = vector.load %arg5[%c0_9, %c0_10] : memref<1x128xf32, #tpu.memory_space<vmem>>, vector<1x128xf32>
    %11 = vector.broadcast %10 : vector<1x128xf32> to vector<16x128xf32>
    %12 = arith.addf %9, %11 : vector<16x128xf32>
    %cst_11 = arith.constant 0.000000e+00 : f32
    %13 = vector.broadcast %cst_11 : f32 to vector<16x128xf32>
    %14 = arith.maximumf %12, %13 : vector<16x128xf32>
    %c0_12 = arith.constant 0 : index
    %c0_13 = arith.constant 0 : index
    %15 = vector.load %arg6[%c0_12, %c0_13] : memref<128x128xf32, #tpu.memory_space<vmem>>, vector<128x128xf32>
    %cst_14 = arith.constant dense<0.000000e+00> : vector<16x128xf32>
    %16 = tpu.matmul %14, %15, %cst_14 {dimension_numbers = #tpu.dot_dimension_numbers<[1], [0], [0], [1], [0, 0, 1, 1], [], []>} : vector<16x128xf32>, vector<128x128xf32>, vector<16x128xf32> -> vector<16x128xf32>
    %c0_15 = arith.constant 0 : index
    %c0_16 = arith.constant 0 : index
    %17 = vector.load %arg7[%c0_15, %c0_16] : memref<1x128xf32, #tpu.memory_space<vmem>>, vector<1x128xf32>
    %18 = vector.broadcast %17 : vector<1x128xf32> to vector<16x128xf32>
    %19 = arith.addf %16, %18 : vector<16x128xf32>
    %cst_17 = arith.constant 0.000000e+00 : f32
    %20 = vector.broadcast %cst_17 : f32 to vector<16x128xf32>
    %21 = arith.maximumf %19, %20 : vector<16x128xf32>
    %c0_18 = arith.constant 0 : index
    %c0_19 = arith.constant 0 : index
    %22 = vector.load %arg8[%c0_18, %c0_19] : memref<128x128xf32, #tpu.memory_space<vmem>>, vector<128x128xf32>
    %cst_20 = arith.constant dense<0.000000e+00> : vector<16x128xf32>
    %23 = tpu.matmul %21, %22, %cst_20 {dimension_numbers = #tpu.dot_dimension_numbers<[1], [0], [0], [1], [0, 0, 1, 1], [], []>} : vector<16x128xf32>, vector<128x128xf32>, vector<16x128xf32> -> vector<16x128xf32>
    %c0_21 = arith.constant 0 : index
    %c0_22 = arith.constant 0 : index
    %24 = vector.load %arg9[%c0_21, %c0_22] : memref<1x128xf32, #tpu.memory_space<vmem>>, vector<1x128xf32>
    %25 = vector.broadcast %24 : vector<1x128xf32> to vector<16x128xf32>
    %26 = arith.addf %23, %25 : vector<16x128xf32>
    %c0_23 = arith.constant 0 : index
    %c0_24 = arith.constant 0 : index
    %27 = vector.load %arg19[%c0_23, %c0_24] : memref<16x128xf32, #tpu.memory_space<vmem>>, vector<16x128xf32>
    tpu.vector_store %arg19[%c0_23, %c0_24], %26 {strides = array<i32>} : memref<16x128xf32, #tpu.memory_space<vmem>>, vector<16x128xf32>,
    %c0_25 = arith.constant 0 : index
    %c0_26 = arith.constant 0 : index
    %28 = vector.load %arg10[%c0_25, %c0_26] : memref<128x128xf32, #tpu.memory_space<vmem>>, vector<128x128xf32>
    %cst_27 = arith.constant dense<0.000000e+00> : vector<16x128xf32>
    %29 = tpu.matmul %26, %28, %cst_27 {dimension_numbers = #tpu.dot_dimension_numbers<[1], [0], [0], [1], [0, 0, 1, 1], [], []>} : vector<16x128xf32>, vector<128x128xf32>, vector<16x128xf32> -> vector<16x128xf32>
    %c0_28 = arith.constant 0 : index
    %c0_29 = arith.constant 0 : index
    %30 = vector.load %arg11[%c0_28, %c0_29] : memref<1x128xf32, #tpu.memory_space<vmem>>, vector<1x128xf32>
    %31 = vector.broadcast %30 : vector<1x128xf32> to vector<16x128xf32>
    %32 = arith.addf %29, %31 : vector<16x128xf32>
    %cst_30 = arith.constant 0.000000e+00 : f32
    %33 = vector.broadcast %cst_30 : f32 to vector<16x128xf32>
    %34 = arith.maximumf %32, %33 : vector<16x128xf32>
    %c0_31 = arith.constant 0 : index
    %c0_32 = arith.constant 0 : index
    %35 = vector.load %arg12[%c0_31, %c0_32] : memref<128x128xf32, #tpu.memory_space<vmem>>, vector<128x128xf32>
    %cst_33 = arith.constant dense<0.000000e+00> : vector<16x128xf32>
    %36 = tpu.matmul %34, %35, %cst_33 {dimension_numbers = #tpu.dot_dimension_numbers<[1], [0], [0], [1], [0, 0, 1, 1], [], []>} : vector<16x128xf32>, vector<128x128xf32>, vector<16x128xf32> -> vector<16x128xf32>
    %c0_34 = arith.constant 0 : index
    %c0_35 = arith.constant 0 : index
    %37 = vector.load %arg13[%c0_34, %c0_35] : memref<1x128xf32, #tpu.memory_space<vmem>>, vector<1x128xf32>
    %38 = vector.broadcast %37 : vector<1x128xf32> to vector<16x128xf32>
    %39 = arith.addf %36, %38 : vector<16x128xf32>
    %cst_36 = arith.constant 0.000000e+00 : f32
    %40 = vector.broadcast %cst_36 : f32 to vector<16x128xf32>
    %41 = arith.maximumf %39, %40 : vector<16x128xf32>
    %c0_37 = arith.constant 0 : index
    %c0_38 = arith.constant 0 : index
    %42 = vector.load %arg14[%c0_37, %c0_38] : memref<128x128xf32, #tpu.memory_space<vmem>>, vector<128x128xf32>
    %cst_39 = arith.constant dense<0.000000e+00> : vector<16x128xf32>
    %43 = tpu.matmul %41, %42, %cst_39 {dimension_numbers = #tpu.dot_dimension_numbers<[1], [0], [0], [1], [0, 0, 1, 1], [], []>} : vector<16x128xf32>, vector<128x128xf32>, vector<16x128xf32> -> vector<16x128xf32>
    %c0_40 = arith.constant 0 : index
    %c0_41 = arith.constant 0 : index
    %44 = vector.load %arg15[%c0_40, %c0_41] : memref<1x128xf32, #tpu.memory_space<vmem>>, vector<1x128xf32>
    %45 = vector.broadcast %44 : vector<1x128xf32> to vector<16x128xf32>
    %46 = arith.addf %43, %45 : vector<16x128xf32>
    %cst_42 = arith.constant 0.000000e+00 : f32
    %47 = vector.broadcast %cst_42 : f32 to vector<16x128xf32>
    %48 = arith.maximumf %46, %47 : vector<16x128xf32>
    %c0_43 = arith.constant 0 : index
    %c0_44 = arith.constant 0 : index
    %49 = vector.load %arg16[%c0_43, %c0_44] : memref<128x128xf32, #tpu.memory_space<vmem>>, vector<128x128xf32>
    %cst_45 = arith.constant dense<0.000000e+00> : vector<16x128xf32>
    %50 = tpu.matmul %48, %49, %cst_45 {dimension_numbers = #tpu.dot_dimension_numbers<[1], [0], [0], [1], [0, 0, 1, 1], [], []>} : vector<16x128xf32>, vector<128x128xf32>, vector<16x128xf32> -> vector<16x128xf32>
    %c0_46 = arith.constant 0 : index
    %c0_47 = arith.constant 0 : index
    %51 = vector.load %arg17[%c0_46, %c0_47] : memref<1x128xf32, #tpu.memory_space<vmem>>, vector<1x128xf32>
    %52 = vector.broadcast %51 : vector<1x128xf32> to vector<16x128xf32>
    %53 = arith.addf %50, %52 : vector<16x128xf32>
    %c0_48 = arith.constant 0 : index
    %c0_49 = arith.constant 0 : index
    %54 = vector.load %arg18[%c0_48, %c0_49] : memref<16x128xf32, #tpu.memory_space<vmem>>, vector<16x128xf32>
    tpu.vector_store %arg18[%c0_48, %c0_49], %53 {strides = array<i32>} : memref<16x128xf32, #tpu.memory_space<vmem>>, vector<16x128xf32>,
    return
  }
  func.func @transform_0(%arg0: i32) -> (i32, i32) {
    %c0_i32 = arith.constant 0 : i32
    %c0_i32_0 = arith.constant 0 : i32
    return %arg0, %c0_i32 : i32, i32
  }
  func.func @transform_1(%arg0: i32) -> (i32, i32) {
    %c0_i32 = arith.constant 0 : i32
    %c0_i32_0 = arith.constant 0 : i32
    %c0_i32_1 = arith.constant 0 : i32
    return %c0_i32, %c0_i32_0 : i32, i32
  }
  func.func @transform_2(%arg0: i32) -> (i32, i32) {
    %c0_i32 = arith.constant 0 : i32
    %c0_i32_0 = arith.constant 0 : i32
    %c0_i32_1 = arith.constant 0 : i32
    return %c0_i32, %c0_i32_0 : i32, i32
  }
  func.func @transform_3(%arg0: i32) -> (i32, i32) {
    %c0_i32 = arith.constant 0 : i32
    %c0_i32_0 = arith.constant 0 : i32
    %c0_i32_1 = arith.constant 0 : i32
    return %c0_i32, %c0_i32_0 : i32, i32
  }
  func.func @transform_4(%arg0: i32) -> (i32, i32) {
    %c0_i32 = arith.constant 0 : i32
    %c0_i32_0 = arith.constant 0 : i32
    %c0_i32_1 = arith.constant 0 : i32
    return %c0_i32, %c0_i32_0 : i32, i32
  }
  func.func @transform_5(%arg0: i32) -> (i32, i32) {
    %c0_i32 = arith.constant 0 : i32
    %c0_i32_0 = arith.constant 0 : i32
    %c0_i32_1 = arith.constant 0 : i32
    return %c0_i32, %c0_i32_0 : i32, i32
  }
  func.func @transform_6(%arg0: i32) -> (i32, i32) {
    %c0_i32 = arith.constant 0 : i32
    %c0_i32_0 = arith.constant 0 : i32
    %c0_i32_1 = arith.constant 0 : i32
    return %c0_i32, %c0_i32_0 : i32, i32
  }
  func.func @transform_7(%arg0: i32) -> (i32, i32) {
    %c0_i32 = arith.constant 0 : i32
    %c0_i32_0 = arith.constant 0 : i32
    %c0_i32_1 = arith.constant 0 : i32
    return %c0_i32, %c0_i32_0 : i32, i32
  }
  func.func @transform_8(%arg0: i32) -> (i32, i32) {
    %c0_i32 = arith.constant 0 : i32
    %c0_i32_0 = arith.constant 0 : i32
    %c0_i32_1 = arith.constant 0 : i32
    return %c0_i32, %c0_i32_0 : i32, i32
  }
  func.func @transform_9(%arg0: i32) -> (i32, i32) {
    %c0_i32 = arith.constant 0 : i32
    %c0_i32_0 = arith.constant 0 : i32
    %c0_i32_1 = arith.constant 0 : i32
    return %c0_i32, %c0_i32_0 : i32, i32
  }
  func.func @transform_10(%arg0: i32) -> (i32, i32) {
    %c0_i32 = arith.constant 0 : i32
    %c0_i32_0 = arith.constant 0 : i32
    %c0_i32_1 = arith.constant 0 : i32
    return %c0_i32, %c0_i32_0 : i32, i32
  }
  func.func @transform_11(%arg0: i32) -> (i32, i32) {
    %c0_i32 = arith.constant 0 : i32
    %c0_i32_0 = arith.constant 0 : i32
    %c0_i32_1 = arith.constant 0 : i32
    return %c0_i32, %c0_i32_0 : i32, i32
  }
  func.func @transform_12(%arg0: i32) -> (i32, i32) {
    %c0_i32 = arith.constant 0 : i32
    %c0_i32_0 = arith.constant 0 : i32
    %c0_i32_1 = arith.constant 0 : i32
    return %c0_i32, %c0_i32_0 : i32, i32
  }
  func.func @transform_13(%arg0: i32) -> (i32, i32) {
    %c0_i32 = arith.constant 0 : i32
    %c0_i32_0 = arith.constant 0 : i32
    %c0_i32_1 = arith.constant 0 : i32
    return %c0_i32, %c0_i32_0 : i32, i32
  }
  func.func @transform_14(%arg0: i32) -> (i32, i32) {
    %c0_i32 = arith.constant 0 : i32
    %c0_i32_0 = arith.constant 0 : i32
    %c0_i32_1 = arith.constant 0 : i32
    return %c0_i32, %c0_i32_0 : i32, i32
  }
  func.func @transform_15(%arg0: i32) -> (i32, i32) {
    %c0_i32 = arith.constant 0 : i32
    %c0_i32_0 = arith.constant 0 : i32
    %c0_i32_1 = arith.constant 0 : i32
    return %c0_i32, %c0_i32_0 : i32, i32
  }
  func.func @transform_16(%arg0: i32) -> (i32, i32) {
    %c0_i32 = arith.constant 0 : i32
    %c0_i32_0 = arith.constant 0 : i32
    %c0_i32_1 = arith.constant 0 : i32
    return %c0_i32, %c0_i32_0 : i32, i32
  }
  func.func @transform_17(%arg0: i32) -> (i32, i32) {
    %c0_i32 = arith.constant 0 : i32
    %c0_i32_0 = arith.constant 0 : i32
    return %arg0, %c0_i32 : i32, i32
  }
  func.func @transform_18(%arg0: i32) -> (i32, i32) {
    %c0_i32 = arith.constant 0 : i32
    %c0_i32_0 = arith.constant 0 : i32
    return %arg0, %c0_i32 : i32, i32
  }
}

module attributes {stable_mosaic.version = 11 : i64} {
  func.func @_ae_fused_kernel(%arg0: i32, %arg1: memref<16x128xf32, #tpu.memory_space<vmem>>, %arg2: memref<128x128xf32, #tpu.memory_space<vmem>>, %arg3: memref<1x128xf32, #tpu.memory_space<vmem>>, %arg4: memref<128x128xf32, #tpu.memory_space<vmem>>, %arg5: memref<1x128xf32, #tpu.memory_space<vmem>>, %arg6: memref<128x128xf32, #tpu.memory_space<vmem>>, %arg7: memref<1x128xf32, #tpu.memory_space<vmem>>, %arg8: memref<128x128xf32, #tpu.memory_space<vmem>>, %arg9: memref<1x128xf32, #tpu.memory_space<vmem>>, %arg10: memref<128x128xf32, #tpu.memory_space<vmem>>, %arg11: memref<1x128xf32, #tpu.memory_space<vmem>>, %arg12: memref<128x128xf32, #tpu.memory_space<vmem>>, %arg13: memref<1x128xf32, #tpu.memory_space<vmem>>, %arg14: memref<128x128xf32, #tpu.memory_space<vmem>>, %arg15: memref<1x128xf32, #tpu.memory_space<vmem>>, %arg16: memref<128x128xf32, #tpu.memory_space<vmem>>, %arg17: memref<1x128xf32, #tpu.memory_space<vmem>>, %arg18: memref<16x128xf32, #tpu.memory_space<vmem>>, %arg19: memref<16x128xf32, #tpu.memory_space<vmem>>) attributes {dimension_semantics = [#tpu.dimension_semantics<parallel>], iteration_bounds = array<i64: 1>, scalar_prefetch = 0 : i64, scratch_operands = 0 : i64, tpu.core_type = #tpu.core_type<tc>, window_params = [{transform_indices = @transform_0, window_bounds = array<i64: 16, 128>}, {pipeline_mode = #tpu.pipeline_mode<synchronous>, transform_indices = @transform_1, window_bounds = array<i64: 128, 128>}, {pipeline_mode = #tpu.pipeline_mode<synchronous>, transform_indices = @transform_2, window_bounds = array<i64: 1, 128>}, {pipeline_mode = #tpu.pipeline_mode<synchronous>, transform_indices = @transform_3, window_bounds = array<i64: 128, 128>}, {pipeline_mode = #tpu.pipeline_mode<synchronous>, transform_indices = @transform_4, window_bounds = array<i64: 1, 128>}, {pipeline_mode = #tpu.pipeline_mode<synchronous>, transform_indices = @transform_5, window_bounds = array<i64: 128, 128>}, {pipeline_mode = #tpu.pipeline_mode<synchronous>, transform_indices = @transform_6, window_bounds = array<i64: 1, 128>}, {pipeline_mode = #tpu.pipeline_mode<synchronous>, transform_indices = @transform_7, window_bounds = array<i64: 128, 128>}, {pipeline_mode = #tpu.pipeline_mode<synchronous>, transform_indices = @transform_8, window_bounds = array<i64: 1, 128>}, {pipeline_mode = #tpu.pipeline_mode<synchronous>, transform_indices = @transform_9, window_bounds = array<i64: 128, 128>}, {pipeline_mode = #tpu.pipeline_mode<synchronous>, transform_indices = @transform_10, window_bounds = array<i64: 1, 128>}, {pipeline_mode = #tpu.pipeline_mode<synchronous>, transform_indices = @transform_11, window_bounds = array<i64: 128, 128>}, {pipeline_mode = #tpu.pipeline_mode<synchronous>, transform_indices = @transform_12, window_bounds = array<i64: 1, 128>}, {pipeline_mode = #tpu.pipeline_mode<synchronous>, transform_indices = @transform_13, window_bounds = array<i64: 128, 128>}, {pipeline_mode = #tpu.pipeline_mode<synchronous>, transform_indices = @transform_14, window_bounds = array<i64: 1, 128>}, {pipeline_mode = #tpu.pipeline_mode<synchronous>, transform_indices = @transform_15, window_bounds = array<i64: 128, 128>}, {pipeline_mode = #tpu.pipeline_mode<synchronous>, transform_indices = @transform_16, window_bounds = array<i64: 1, 128>}, {transform_indices = @transform_17, window_bounds = array<i64: 16, 128>}, {transform_indices = @transform_18, window_bounds = array<i64: 16, 128>}]} {
    %c0 = arith.constant 0 : index
    %c0_0 = arith.constant 0 : index
    %0 = vector.load %arg1[%c0, %c0_0] : memref<16x128xf32, #tpu.memory_space<vmem>>, vector<16x128xf32>
    %c0_1 = arith.constant 0 : index
    %c0_2 = arith.constant 0 : index
    %1 = vector.load %arg2[%c0_1, %c0_2] : memref<128x128xf32, #tpu.memory_space<vmem>>, vector<128x128xf32>
    %cst = arith.constant dense<0.000000e+00> : vector<16x128xf32>
    %2 = tpu.matmul %0, %1, %cst {dimension_numbers = #tpu.dot_dimension_numbers<[1], [0], [0], [1], [0, 0, 1, 1], [], []>} : vector<16x128xf32>, vector<128x128xf32>, vector<16x128xf32> -> vector<16x128xf32>
    %c0_3 = arith.constant 0 : index
    %c0_4 = arith.constant 0 : index
    %3 = vector.load %arg3[%c0_3, %c0_4] : memref<1x128xf32, #tpu.memory_space<vmem>>, vector<1x128xf32>
    %4 = vector.broadcast %3 : vector<1x128xf32> to vector<16x128xf32>
    %5 = arith.addf %2, %4 : vector<16x128xf32>
    %cst_5 = arith.constant 0.000000e+00 : f32
    %6 = vector.broadcast %cst_5 : f32 to vector<16x128xf32>
    %7 = arith.maximumf %5, %6 : vector<16x128xf32>
    %c0_6 = arith.constant 0 : index
    %c0_7 = arith.constant 0 : index
    %8 = vector.load %arg4[%c0_6, %c0_7] : memref<128x128xf32, #tpu.memory_space<vmem>>, vector<128x128xf32>
    %cst_8 = arith.constant dense<0.000000e+00> : vector<16x128xf32>
    %9 = tpu.matmul %7, %8, %cst_8 {dimension_numbers = #tpu.dot_dimension_numbers<[1], [0], [0], [1], [0, 0, 1, 1], [], []>} : vector<16x128xf32>, vector<128x128xf32>, vector<16x128xf32> -> vector<16x128xf32>
    %c0_9 = arith.constant 0 : index
    %c0_10 = arith.constant 0 : index
    %10 = vector.load %arg5[%c0_9, %c0_10] : memref<1x128xf32, #tpu.memory_space<vmem>>, vector<1x128xf32>
    %11 = vector.broadcast %10 : vector<1x128xf32> to vector<16x128xf32>
    %12 = arith.addf %9, %11 : vector<16x128xf32>
    %cst_11 = arith.constant 0.000000e+00 : f32
    %13 = vector.broadcast %cst_11 : f32 to vector<16x128xf32>
    %14 = arith.maximumf %12, %13 : vector<16x128xf32>
    %c0_12 = arith.constant 0 : index
    %c0_13 = arith.constant 0 : index
    %15 = vector.load %arg6[%c0_12, %c0_13] : memref<128x128xf32, #tpu.memory_space<vmem>>, vector<128x128xf32>
    %cst_14 = arith.constant dense<0.000000e+00> : vector<16x128xf32>
    %16 = tpu.matmul %14, %15, %cst_14 {dimension_numbers = #tpu.dot_dimension_numbers<[1], [0], [0], [1], [0, 0, 1, 1], [], []>} : vector<16x128xf32>, vector<128x128xf32>, vector<16x128xf32> -> vector<16x128xf32>
    %c0_15 = arith.constant 0 : index
    %c0_16 = arith.constant 0 : index
    %17 = vector.load %arg7[%c0_15, %c0_16] : memref<1x128xf32, #tpu.memory_space<vmem>>, vector<1x128xf32>
    %18 = vector.broadcast %17 : vector<1x128xf32> to vector<16x128xf32>
    %19 = arith.addf %16, %18 : vector<16x128xf32>
    %cst_17 = arith.constant 0.000000e+00 : f32
    %20 = vector.broadcast %cst_17 : f32 to vector<16x128xf32>
    %21 = arith.maximumf %19, %20 : vector<16x128xf32>
    %c0_18 = arith.constant 0 : index
    %c0_19 = arith.constant 0 : index
    %22 = vector.load %arg8[%c0_18, %c0_19] : memref<128x128xf32, #tpu.memory_space<vmem>>, vector<128x128xf32>
    %cst_20 = arith.constant dense<0.000000e+00> : vector<16x128xf32>
    %23 = tpu.matmul %21, %22, %cst_20 {dimension_numbers = #tpu.dot_dimension_numbers<[1], [0], [0], [1], [0, 0, 1, 1], [], []>} : vector<16x128xf32>, vector<128x128xf32>, vector<16x128xf32> -> vector<16x128xf32>
    %c0_21 = arith.constant 0 : index
    %c0_22 = arith.constant 0 : index
    %24 = vector.load %arg9[%c0_21, %c0_22] : memref<1x128xf32, #tpu.memory_space<vmem>>, vector<1x128xf32>
    %25 = vector.broadcast %24 : vector<1x128xf32> to vector<16x128xf32>
    %26 = arith.addf %23, %25 : vector<16x128xf32>
    %c0_23 = arith.constant 0 : index
    %c0_24 = arith.constant 0 : index
    %27 = vector.load %arg19[%c0_23, %c0_24] : memref<16x128xf32, #tpu.memory_space<vmem>>, vector<16x128xf32>
    tpu.vector_store %arg19[%c0_23, %c0_24], %26 {strides = array<i32>} : memref<16x128xf32, #tpu.memory_space<vmem>>, vector<16x128xf32>,
    %c0_25 = arith.constant 0 : index
    %c0_26 = arith.constant 0 : index
    %28 = vector.load %arg10[%c0_25, %c0_26] : memref<128x128xf32, #tpu.memory_space<vmem>>, vector<128x128xf32>
    %cst_27 = arith.constant dense<0.000000e+00> : vector<16x128xf32>
    %29 = tpu.matmul %26, %28, %cst_27 {dimension_numbers = #tpu.dot_dimension_numbers<[1], [0], [0], [1], [0, 0, 1, 1], [], []>} : vector<16x128xf32>, vector<128x128xf32>, vector<16x128xf32> -> vector<16x128xf32>
    %c0_28 = arith.constant 0 : index
    %c0_29 = arith.constant 0 : index
    %30 = vector.load %arg11[%c0_28, %c0_29] : memref<1x128xf32, #tpu.memory_space<vmem>>, vector<1x128xf32>
    %31 = vector.broadcast %30 : vector<1x128xf32> to vector<16x128xf32>
    %32 = arith.addf %29, %31 : vector<16x128xf32>
    %cst_30 = arith.constant 0.000000e+00 : f32
    %33 = vector.broadcast %cst_30 : f32 to vector<16x128xf32>
    %34 = arith.maximumf %32, %33 : vector<16x128xf32>
    %c0_31 = arith.constant 0 : index
    %c0_32 = arith.constant 0 : index
    %35 = vector.load %arg12[%c0_31, %c0_32] : memref<128x128xf32, #tpu.memory_space<vmem>>, vector<128x128xf32>
    %cst_33 = arith.constant dense<0.000000e+00> : vector<16x128xf32>
    %36 = tpu.matmul %34, %35, %cst_33 {dimension_numbers = #tpu.dot_dimension_numbers<[1], [0], [0], [1], [0, 0, 1, 1], [], []>} : vector<16x128xf32>, vector<128x128xf32>, vector<16x128xf32> -> vector<16x128xf32>
    %c0_34 = arith.constant 0 : index
    %c0_35 = arith.constant 0 : index
    %37 = vector.load %arg13[%c0_34, %c0_35] : memref<1x128xf32, #tpu.memory_space<vmem>>, vector<1x128xf32>
    %38 = vector.broadcast %37 : vector<1x128xf32> to vector<16x128xf32>
    %39 = arith.addf %36, %38 : vector<16x128xf32>
    %cst_36 = arith.constant 0.000000e+00 : f32
    %40 = vector.broadcast %cst_36 : f32 to vector<16x128xf32>
    %41 = arith.maximumf %39, %40 : vector<16x128xf32>
    %c0_37 = arith.constant 0 : index
    %c0_38 = arith.constant 0 : index
    %42 = vector.load %arg14[%c0_37, %c0_38] : memref<128x128xf32, #tpu.memory_space<vmem>>, vector<128x128xf32>
    %cst_39 = arith.constant dense<0.000000e+00> : vector<16x128xf32>
    %43 = tpu.matmul %41, %42, %cst_39 {dimension_numbers = #tpu.dot_dimension_numbers<[1], [0], [0], [1], [0, 0, 1, 1], [], []>} : vector<16x128xf32>, vector<128x128xf32>, vector<16x128xf32> -> vector<16x128xf32>
    %c0_40 = arith.constant 0 : index
    %c0_41 = arith.constant 0 : index
    %44 = vector.load %arg15[%c0_40, %c0_41] : memref<1x128xf32, #tpu.memory_space<vmem>>, vector<1x128xf32>
    %45 = vector.broadcast %44 : vector<1x128xf32> to vector<16x128xf32>
    %46 = arith.addf %43, %45 : vector<16x128xf32>
    %cst_42 = arith.constant 0.000000e+00 : f32
    %47 = vector.broadcast %cst_42 : f32 to vector<16x128xf32>
    %48 = arith.maximumf %46, %47 : vector<16x128xf32>
    %c0_43 = arith.constant 0 : index
    %c0_44 = arith.constant 0 : index
    %49 = vector.load %arg16[%c0_43, %c0_44] : memref<128x128xf32, #tpu.memory_space<vmem>>, vector<128x128xf32>
    %cst_45 = arith.constant dense<0.000000e+00> : vector<16x128xf32>
    %50 = tpu.matmul %48, %49, %cst_45 {dimension_numbers = #tpu.dot_dimension_numbers<[1], [0], [0], [1], [0, 0, 1, 1], [], []>} : vector<16x128xf32>, vector<128x128xf32>, vector<16x128xf32> -> vector<16x128xf32>
    %c0_46 = arith.constant 0 : index
    %c0_47 = arith.constant 0 : index
    %51 = vector.load %arg17[%c0_46, %c0_47] : memref<1x128xf32, #tpu.memory_space<vmem>>, vector<1x128xf32>
    %52 = vector.broadcast %51 : vector<1x128xf32> to vector<16x128xf32>
    %53 = arith.addf %50, %52 : vector<16x128xf32>
    %c0_48 = arith.constant 0 : index
    %c0_49 = arith.constant 0 : index
    %54 = vector.load %arg18[%c0_48, %c0_49] : memref<16x128xf32, #tpu.memory_space<vmem>>, vector<16x128xf32>
    tpu.vector_store %arg18[%c0_48, %c0_49], %53 {strides = array<i32>} : memref<16x128xf32, #tpu.memory_space<vmem>>, vector<16x128xf32>,
    return
  }
  func.func @transform_0(%arg0: i32) -> (i32, i32) {
    %c0_i32 = arith.constant 0 : i32
    %c0_i32_0 = arith.constant 0 : i32
    return %arg0, %c0_i32 : i32, i32
  }
  func.func @transform_1(%arg0: i32) -> (i32, i32) {
    %c0_i32 = arith.constant 0 : i32
    %c0_i32_0 = arith.constant 0 : i32
    %c0_i32_1 = arith.constant 0 : i32
    return %c0_i32, %c0_i32_0 : i32, i32
  }
  func.func @transform_2(%arg0: i32) -> (i32, i32) {
    %c0_i32 = arith.constant 0 : i32
    %c0_i32_0 = arith.constant 0 : i32
    %c0_i32_1 = arith.constant 0 : i32
    return %c0_i32, %c0_i32_0 : i32, i32
  }
  func.func @transform_3(%arg0: i32) -> (i32, i32) {
    %c0_i32 = arith.constant 0 : i32
    %c0_i32_0 = arith.constant 0 : i32
    %c0_i32_1 = arith.constant 0 : i32
    return %c0_i32, %c0_i32_0 : i32, i32
  }
  func.func @transform_4(%arg0: i32) -> (i32, i32) {
    %c0_i32 = arith.constant 0 : i32
    %c0_i32_0 = arith.constant 0 : i32
    %c0_i32_1 = arith.constant 0 : i32
    return %c0_i32, %c0_i32_0 : i32, i32
  }
  func.func @transform_5(%arg0: i32) -> (i32, i32) {
    %c0_i32 = arith.constant 0 : i32
    %c0_i32_0 = arith.constant 0 : i32
    %c0_i32_1 = arith.constant 0 : i32
    return %c0_i32, %c0_i32_0 : i32, i32
  }
  func.func @transform_6(%arg0: i32) -> (i32, i32) {
    %c0_i32 = arith.constant 0 : i32
    %c0_i32_0 = arith.constant 0 : i32
    %c0_i32_1 = arith.constant 0 : i32
    return %c0_i32, %c0_i32_0 : i32, i32
  }
  func.func @transform_7(%arg0: i32) -> (i32, i32) {
    %c0_i32 = arith.constant 0 : i32
    %c0_i32_0 = arith.constant 0 : i32
    %c0_i32_1 = arith.constant 0 : i32
    return %c0_i32, %c0_i32_0 : i32, i32
  }
  func.func @transform_8(%arg0: i32) -> (i32, i32) {
    %c0_i32 = arith.constant 0 : i32
    %c0_i32_0 = arith.constant 0 : i32
    %c0_i32_1 = arith.constant 0 : i32
    return %c0_i32, %c0_i32_0 : i32, i32
  }
  func.func @transform_9(%arg0: i32) -> (i32, i32) {
    %c0_i32 = arith.constant 0 : i32
    %c0_i32_0 = arith.constant 0 : i32
    %c0_i32_1 = arith.constant 0 : i32
    return %c0_i32, %c0_i32_0 : i32, i32
  }
  func.func @transform_10(%arg0: i32) -> (i32, i32) {
    %c0_i32 = arith.constant 0 : i32
    %c0_i32_0 = arith.constant 0 : i32
    %c0_i32_1 = arith.constant 0 : i32
    return %c0_i32, %c0_i32_0 : i32, i32
  }
  func.func @transform_11(%arg0: i32) -> (i32, i32) {
    %c0_i32 = arith.constant 0 : i32
    %c0_i32_0 = arith.constant 0 : i32
    %c0_i32_1 = arith.constant 0 : i32
    return %c0_i32, %c0_i32_0 : i32, i32
  }
  func.func @transform_12(%arg0: i32) -> (i32, i32) {
    %c0_i32 = arith.constant 0 : i32
    %c0_i32_0 = arith.constant 0 : i32
    %c0_i32_1 = arith.constant 0 : i32
    return %c0_i32, %c0_i32_0 : i32, i32
  }
  func.func @transform_13(%arg0: i32) -> (i32, i32) {
    %c0_i32 = arith.constant 0 : i32
    %c0_i32_0 = arith.constant 0 : i32
    %c0_i32_1 = arith.constant 0 : i32
    return %c0_i32, %c0_i32_0 : i32, i32
  }
  func.func @transform_14(%arg0: i32) -> (i32, i32) {
    %c0_i32 = arith.constant 0 : i32
    %c0_i32_0 = arith.constant 0 : i32
    %c0_i32_1 = arith.constant 0 : i32
    return %c0_i32, %c0_i32_0 : i32, i32
  }
  func.func @transform_15(%arg0: i32) -> (i32, i32) {
    %c0_i32 = arith.constant 0 : i32
    %c0_i32_0 = arith.constant 0 : i32
    %c0_i32_1 = arith.constant 0 : i32
    return %c0_i32, %c0_i32_0 : i32, i32
  }
  func.func @transform_16(%arg0: i32) -> (i32, i32) {
    %c0_i32 = arith.constant 0 : i32
    %c0_i32_0 = arith.constant 0 : i32
    %c0_i32_1 = arith.constant 0 : i32
    return %c0_i32, %c0_i32_0 : i32, i32
  }
  func.func @transform_17(%arg0: i32) -> (i32, i32) {
    %c0_i32 = arith.constant 0 : i32
    %c0_i32_0 = arith.constant 0 : i32
    return %arg0, %c0_i32 : i32, i32
  }
  func.func @transform_18(%arg0: i32) -> (i32, i32) {
    %c0_i32 = arith.constant 0 : i32
    %c0_i32_0 = arith.constant 0 : i32
    return %arg0, %c0_i32 : i32, i32
  }
}

</mosaic_0001>

<bundles_post_ra>
// kernel: tpu_custom_call.1
= control target key start
LH: loop header
LB: loop body
LE: loop exit
PB: predicated region body
PF: predicated region fallthrough
CT: control target
= control target key end

     0   :  { %s1898_s0 = inlined_call_operand.hbm [shape: f32[16,128], index: 0, kind: input, shape index: {}]   ;;  %s1899_s1 = inlined_call_operand.hbm [shape: f32[128,128], index: 1, kind: input, shape index: {}]   ;;  %s1900_s2 = inlined_call_operand.vmem [shape: f32[1,128], index: 2, kind: input, shape index: {}]   ;;  %s1901_s3 = inlined_call_operand.hbm [shape: f32[128,128], index: 3, kind: input, shape index: {}]   ;;  %s1902_s4 = inlined_call_operand.vmem [shape: f32[1,128], index: 4, kind: input, shape index: {}]   ;;  %s1903_s5 = inlined_call_operand.hbm [shape: f32[128,128], index: 5, kind: input, shape index: {}]   ;;  %s1904_s6 = inlined_call_operand.vmem [shape: f32[1,128], index: 6, kind: input, shape index: {}]   ;;  %s1905_s7 = inlined_call_operand.hbm [shape: f32[128,128], index: 7, kind: input, shape index: {}]   ;;  %s1906_s8 = inlined_call_operand.vmem [shape: f32[1,128], index: 8, kind: input, shape index: {}]   ;;  %s1907_s9 = inlined_call_operand.hbm [shape: f32[128,128], index: 9, kind: input, shape index: {}]   ;;  %s1908_s10 = inlined_call_operand.vmem [shape: f32[1,128], index: 10, kind: input, shape index: {}]   ;;  %s1909_s11 = inlined_call_operand.hbm [shape: f32[128,128], index: 11, kind: input, shape index: {}]   ;;  %s1910_s12 = inlined_call_operand.vmem [shape: f32[1,128], index: 12, kind: input, shape index: {}]   ;;  %s1911_s13 = inlined_call_operand.hbm [shape: f32[128,128], index: 13, kind: input, shape index: {}]   ;;  %s1912_s14 = inlined_call_operand.vmem [shape: f32[1,128], index: 14, kind: input, shape index: {}]   ;;  %s1913_s15 = inlined_call_operand.hbm [shape: f32[128,128], index: 15, kind: input, shape index: {}]   ;;  %s1914_s16 = inlined_call_operand.vmem [shape: f32[1,128], index: 16, kind: input, shape index: {}]   ;;  %s1915_s17 = inlined_call_operand.hbm [shape: f32[16,128], index: 17, kind: output, shape index: {0}]   ;;  %s1916_s18 = inlined_call_operand.hbm [shape: f32[16,128], index: 18, kind: output, shape index: {1}]  }
   0x1   :  { %1917 = sst [smem:[#allocation27_spill]] %s1898_s0 }
   0x2   :  { %1918 = sst [smem:[#allocation28_spill]] %s1899_s1 }
   0x3   :  { %1919 = sst [smem:[#allocation29_spill]] %s1900_s2 }
   0x4   :  { %24 = vsyncpa [#allocation3], 0 }
   0x5   :  { %25 = vsyncpa [#allocation6], 0 }
   0x6   :  { %26 = vsyncpa [#allocation9], 0 }
   0x7   :  { %27 = vsyncpa [#allocation12], 0 }
   0x8   :  { %28 = vsyncpa [#allocation15], 0 }
   0x9   :  { %29 = vsyncpa [#allocation4], 0 }
   0xa   :  { %30 = vsyncpa [#allocation19], 0  ;;  %s1700_s27 = smov [#allocation5]   ;;  %s1701_s29 = smov [#allocation8]  }
   0xb   :  { %s48_s28 = sshll.u32 %s1700_s27, 4  ;;  %s76_s30 = sshll.u32 %s1701_s29, 4  ;;  %s49_s28 = int_to_ptr.vmem [resolvable:$true] %s48_s28  ;;  %s77_s30 = int_to_ptr.vmem [resolvable:$true] %s76_s30 }
   0xc   :  { %s1474_s0 = scalar_lea.vmem %s49_s28, 2048  ;;  %p1479_p1 = scmp.lt.s32.totalorder %s49_s28, %s49_s28 }
   0xd   :  { %p1475_p0 = scmp.ne.s32.totalorder %s49_s28, %s1474_s0  ;;  %p1480_p2 = scmp.lt.s32.totalorder %s1474_s0, %s1474_s0 }
   0xf   :  { %p1481_p3 = por %p1480_p2, %p1479_p1 }
  0x11   :  { %p1482_p4 = pnand %p1481_p3, %p1475_p0 }
  0x13   :  { %1485 = shalt.err (!%p1482_p4)
}
  0x14   :  { %s1702_s19 = smov 128   ;;  %s1703_s1 = smov 8  }
  0x15   :  { %s1920_s22 = sld [smem:[#allocation28_spill]]  ;;  %s1494_s2 = scalar_lea.vmem %s77_s30, 2048 }
  0x16   :  { %p1495_p5 = scmp.ne.s32.totalorder %s77_s30, %s1494_s2  ;;  %p1499_p6 = scmp.lt.s32.totalorder %s77_s30, %s77_s30 }
  0x17   :  { %p1500_p7 = scmp.lt.s32.totalorder %s1494_s2, %s1494_s2 }
  0x19   :  { %p1501_p8 = por %p1500_p7, %p1499_p6 }
  0x1b   :  { %54 = dma.hbm_to_vmem [thread:$0]  %s1920_s22, 2048, %s49_s28, [#allocation6], %s1702_s19, %s1702_s19, %s1703_s1  }
  0x1c   :  { %p1502_p9 = pnand %p1501_p8, %p1495_p5 }
  0x1e   :  { %1505 = shalt.err (!%p1502_p9)
}
  0x1f   :  { %82 = dma.hbm_to_vmem [thread:$0]  %s1903_s5, 2048, %s77_s30, [#allocation9], %s1702_s19, %s1702_s19, %s1703_s1  }
  0x20   :  { %s1704_s25 = smov [#allocation11]   ;;  %s1705_s27 = smov [#allocation14]  }
  0x21   :  { %s104_s26 = sshll.u32 %s1704_s25, 4  ;;  %s132_s29 = sshll.u32 %s1705_s27, 4  ;;  %s105_s26 = int_to_ptr.vmem [resolvable:$true] %s104_s26  ;;  %s133_s29 = int_to_ptr.vmem [resolvable:$true] %s132_s29 }
  0x22   :  { %s1514_s28 = scalar_lea.vmem %s105_s26, 2048  ;;  %p1519_p11 = scmp.lt.s32.totalorder %s105_s26, %s105_s26 }
  0x23   :  { %p1515_p10 = scmp.ne.s32.totalorder %s105_s26, %s1514_s28  ;;  %p1520_p12 = scmp.lt.s32.totalorder %s1514_s28, %s1514_s28 }
  0x25   :  { %p1521_p13 = por %p1520_p12, %p1519_p11 }
  0x27   :  { %p1522_p0 = pnand %p1521_p13, %p1515_p10 }
  0x29   :  { %1525 = shalt.err (!%p1522_p0)
}
  0x2a   :  { %110 = dma.hbm_to_vmem [thread:$0]  %s1907_s9, 2048, %s105_s26, [#allocation12], %s1702_s19, %s1702_s19, %s1703_s1  }
  0x2b   :  { %s1534_s5 = scalar_lea.vmem %s133_s29, 2048  ;;  %p1539_p2 = scmp.lt.s32.totalorder %s133_s29, %s133_s29 }
  0x2c   :  { %p1535_p1 = scmp.ne.s32.totalorder %s133_s29, %s1534_s5  ;;  %p1540_p3 = scmp.lt.s32.totalorder %s1534_s5, %s1534_s5 }
  0x2e   :  { %p1541_p4 = por %p1540_p3, %p1539_p2 }
  0x30   :  { %p1542_p5 = pnand %p1541_p4, %p1535_p1 }
  0x32   :  { %1545 = shalt.err (!%p1542_p5)
}
  0x33   :  { %138 = dma.hbm_to_vmem [thread:$0]  %s1911_s13, 2048, %s133_s29, [#allocation15], %s1702_s19, %s1702_s19, %s1703_s1  }
  0x34   :  { %s1706_s22 = smov [#allocation2]   ;;  %s1707_s23 = smov [#allocation7]  }
  0x35   :  { %s36_s2 = sshll.u32 %s1706_s22, 4  ;;  %s62_s24 = sshll.u32 %s1707_s23, 4  ;;  %s37_s2 = int_to_ptr.vmem [resolvable:$true] %s36_s2  ;;  %s63_s24 = int_to_ptr.vmem [resolvable:$true] %s62_s24 }
  0x36   :  { %s1554_s9 = scalar_lea.vmem %s37_s2, 256  ;;  %p1559_p7 = scmp.lt.s32.totalorder %s37_s2, %s37_s2 }
  0x37   :  { %p1555_p6 = scmp.ne.s32.totalorder %s37_s2, %s1554_s9  ;;  %p1560_p8 = scmp.lt.s32.totalorder %s1554_s9, %s1554_s9 }
  0x39   :  { %p1561_p9 = por %p1560_p8, %p1559_p7 }
  0x3b   :  { %p1562_p10 = pnand %p1561_p9, %p1555_p6 }
  0x3d   :  { %1565 = shalt.err (!%p1562_p10)
}
  0x3e   :  { %s1921_s27 = sld [smem:[#allocation27_spill]]  ;;  %s1574_s13 = scalar_lea.vmem %s63_s24, 2048 }
  0x3f   :  { %p1575_p11 = scmp.ne.s32.totalorder %s63_s24, %s1574_s13  ;;  %p1579_p12 = scmp.lt.s32.totalorder %s63_s24, %s63_s24 }
  0x40   :  { %p1580_p13 = scmp.lt.s32.totalorder %s1574_s13, %s1574_s13 }
  0x42   :  { %p1581_p0 = por %p1580_p13, %p1579_p12 }
  0x44   :  { %42 = dma.hbm_to_vmem [thread:$0]  %s1921_s27, 256, %s37_s2, [#allocation3], %s1702_s19, %s1702_s19, %s1703_s1  }
  0x45   :  { %p1582_p1 = pnand %p1581_p0, %p1575_p11 }
  0x47   :  { %1585 = shalt.err (!%p1582_p1)
}
  0x48   :  { %68 = dma.hbm_to_vmem [thread:$0]  %s1901_s3, 2048, %s63_s24, [#allocation6], %s1702_s19, %s1702_s19, %s1703_s1  }
  0x49   :  { %s1708_s0 = smov [#allocation10]   ;;  %s1709_s5 = smov [#allocation13]  }
  0x4a   :  { %s90_s20 = sshll.u32 %s1708_s0, 4  ;;  %s118_s30 = sshll.u32 %s1709_s5, 4  ;;  %s91_s20 = int_to_ptr.vmem [resolvable:$true] %s90_s20  ;;  %s119_s30 = int_to_ptr.vmem [resolvable:$true] %s118_s30 }
  0x4b   :  { %s1594_s21 = scalar_lea.vmem %s91_s20, 2048  ;;  %p1599_p3 = scmp.lt.s32.totalorder %s91_s20, %s91_s20 }
  0x4c   :  { %p1595_p2 = scmp.ne.s32.totalorder %s91_s20, %s1594_s21  ;;  %p1600_p4 = scmp.lt.s32.totalorder %s1594_s21, %s1594_s21 }
  0x4e   :  { %p1601_p5 = por %p1600_p4, %p1599_p3 }
  0x50   :  { %p1602_p6 = pnand %p1601_p5, %p1595_p2 }
  0x52   :  { %1605 = shalt.err (!%p1602_p6)
}
  0x53   :  { %96 = dma.hbm_to_vmem [thread:$0]  %s1905_s7, 2048, %s91_s20, [#allocation9], %s1702_s19, %s1702_s19, %s1703_s1  }
  0x54   :  { %s1614_s3 = scalar_lea.vmem %s119_s30, 2048  ;;  %p1619_p8 = scmp.lt.s32.totalorder %s119_s30, %s119_s30 }
  0x55   :  { %p1615_p7 = scmp.ne.s32.totalorder %s119_s30, %s1614_s3  ;;  %p1620_p9 = scmp.lt.s32.totalorder %s1614_s3, %s1614_s3 }
  0x57   :  { %p1621_p10 = por %p1620_p9, %p1619_p8 }
  0x59   :  { %p1622_p11 = pnand %p1621_p10, %p1615_p7 }
  0x5b   :  { %1625 = shalt.err (!%p1622_p11)
}
  0x5c   :  { %124 = dma.hbm_to_vmem [thread:$0]  %s1909_s11, 2048, %s119_s30, [#allocation12], %s1702_s19, %s1702_s19, %s1703_s1  }
  0x5d   :  { %s1710_s9 = smov [#allocation16]  }
  0x5e   :  { %s146_s25 = sshll.u32 %s1710_s9, 4  ;;  %s147_s25 = int_to_ptr.vmem [resolvable:$true] %s146_s25 }
  0x5f   :  { %s1634_s26 = scalar_lea.vmem %s147_s25, 2048  ;;  %p1639_p13 = scmp.lt.s32.totalorder %s147_s25, %s147_s25 }
  0x60   :  { %p1635_p12 = scmp.ne.s32.totalorder %s147_s25, %s1634_s26  ;;  %p1640_p0 = scmp.lt.s32.totalorder %s1634_s26, %s1634_s26 }
  0x62   :  { %p1641_p1 = por %p1640_p0, %p1639_p13 }
  0x64   :  { %p1642_p2 = pnand %p1641_p1, %p1635_p12 }
  0x66   :  { %1645 = shalt.err (!%p1642_p2)
}
  0x67   :  { %152 = dma.hbm_to_vmem [thread:$0]  %s1913_s15, 2048, %s147_s25, [#allocation15], %s1702_s19, %s1702_s19, %s1703_s1  }
  0x68   :  { %1686 = dma.done.wait [#allocation3], 256  }
  0x69   :  { %1687 = vsyncadd [#allocation3], 4294967040 }
  0x6a   :  { %1688 = dma.done.wait [#allocation6], 4096  }
  0x6b   :  { %1689 = vsyncadd [#allocation6], 4294963200 }
  0x6c   :  { %1690 = dma.done.wait [#allocation9], 4096  }
  0x6d   :  { %1691 = vsyncadd [#allocation9], 4294963200 }
  0x6e   :  { %1692 = dma.done.wait [#allocation12], 4096  }
  0x6f   :  { %1693 = vsyncadd [#allocation12], 4294963200 }
  0x70   :  { %1694 = dma.done.wait [#allocation15], 4096  }
  0x71   :  { %1695 = vsyncadd [#allocation15], 4294963200  ;;  %v199_v0 = vld [vmem:[#allocation5 + $0x78] sm:$0xff]  ;;  %v198_v1 = vld [vmem:[#allocation5 + $0x70] sm:$0xff]  ;;  %s1922_s13 = sld [smem:[#allocation29_spill]]  ;;  %s1711_s22 = smov [#allocation18]  }
  0x72   :  { %1173 = vmatprep.subr.mxu0 %v199_v0  ;;  %v197_v2 = vld [vmem:[#allocation5 + $0x68] sm:$0xff]  ;;  %v196_v3 = vld [vmem:[#allocation5 + $0x60] sm:$0xff]  ;;  %v182_v4 = vld [vmem:[#allocation2] sm:$0xff]  ;;  %s1001_s2 = sshll.u32 %s1711_s22, 4  ;;  %s1002_s2 = int_to_ptr.vmem [resolvable:$true] %s1001_s2 }
  0x73   :  { %1174 = vmatpush3.msra.mxu0 %v199_v0  ;;  %v195_v5 = vld [vmem:[#allocation5 + $0x58] sm:$0xff]  ;;  %1205 = vmatprep.mubr.f32.mxu0 %v182_v4  ;;  %v298_v7 = vld [vmem:[#allocation7 + $0x70] sm:$0xff]  ;;  %v297_v9 = vld [vmem:[#allocation7 + $0x68] sm:$0xff]  ;;  %s1646_s3 = scalar_lea.vmem %s1002_s2, 256  ;;  %p1651_p4 = scmp.lt.s32.totalorder %s1002_s2, %s1002_s2 }
  0x74   :  { %1175 = vmatprep.subr.mxu0 %v198_v1  ;;  %v299_v6 = vld [vmem:[#allocation7 + $0x78] sm:$0xff]  ;;  %v194_v8 = vld [vmem:[#allocation5 + $0x50] sm:$0xff]  ;;  %v193_v10 = vld [vmem:[#allocation5 + $0x48] sm:$0xff]  ;;  %p1647_p3 = scmp.ne.s32.totalorder %s1002_s2, %s1646_s3  ;;  %p1652_p5 = scmp.lt.s32.totalorder %s1646_s3, %s1646_s3 }
  0x75   :  { %1176 = vmatpush3.msra.mxu0 %v198_v1  ;;  %1208 = vmatprep.subr.mxu1 %v299_v6  ;;  %v296_v11 = vld [vmem:[#allocation7 + $0x60] sm:$0xff]  ;;  %v295_v13 = vld [vmem:[#allocation7 + $0x58] sm:$0xff]  ;;  %v294_v15 = vld [vmem:[#allocation7 + $0x50] sm:$0xff] }
  0x76   :  { %1177 = vmatprep.subr.mxu0 %v197_v2  ;;  %1209 = vmatpush3.msra.mxu1 %v299_v6  ;;  %v192_v12 = vld [vmem:[#allocation5 + $0x40] sm:$0xff]  ;;  %v191_v14 = vld [vmem:[#allocation5 + $0x38] sm:$0xff]  ;;  %v190_v16 = vld [vmem:[#allocation5 + $0x30] sm:$0xff]  ;;  %p1653_p6 = por %p1652_p5, %p1651_p4 }
  0x77   :  { %1178 = vmatpush3.msra.mxu0 %v197_v2  ;;  %1210 = vmatprep.subr.mxu1 %v298_v7  ;;  %v293_v17 = vld [vmem:[#allocation7 + $0x48] sm:$0xff]  ;;  %v292_v19 = vld [vmem:[#allocation7 + $0x40] sm:$0xff]  ;;  %v291_v21 = vld [vmem:[#allocation7 + $0x38] sm:$0xff] }
  0x78   :  { %1179 = vmatprep.subr.mxu0 %v196_v3  ;;  %1211 = vmatpush3.msra.mxu1 %v298_v7  ;;  %v189_v18 = vld [vmem:[#allocation5 + $0x28] sm:$0xff]  ;;  %v188_v20 = vld [vmem:[#allocation5 + $0x20] sm:$0xff]  ;;  %v187_v22 = vld [vmem:[#allocation5 + $0x18] sm:$0xff]  ;;  %p1654_p7 = pnand %p1653_p6, %p1647_p3 }
  0x79   :  { %1180 = vmatpush3.msra.mxu0 %v196_v3  ;;  %1212 = vmatprep.subr.mxu1 %v297_v9  ;;  %v290_v23 = vld [vmem:[#allocation7 + $0x30] sm:$0xff]  ;;  %v289_v25 = vld [vmem:[#allocation7 + $0x28] sm:$0xff]  ;;  %v288_v27 = vld [vmem:[#allocation7 + $0x20] sm:$0xff] }
  0x7a   :  { %1181 = vmatprep.subr.mxu0 %v195_v5  ;;  %1213 = vmatpush3.msra.mxu1 %v297_v9  ;;  %v186_v24 = vld [vmem:[#allocation5 + $0x10] sm:$0xff]  ;;  %v185_v26 = vld [vmem:[#allocation5 + $0x8] sm:$0xff]  ;;  %v184_v28 = vld [vmem:[#allocation5] sm:$0xff] }
  0x7b   :  { %1182 = vmatpush3.msra.mxu0 %v195_v5  ;;  %1214 = vmatprep.subr.mxu1 %v296_v11  ;;  %v183_v29 = vld [vmem:[#allocation2 + $0x8] sm:$0xff]  ;;  %v286_v31 = vld [vmem:[#allocation7 + $0x10] sm:$0xff]  ;;  %v285_v32 = vld [vmem:[#allocation7 + $0x8] sm:$0xff] }
  0x7c   :  { %1183 = vmatprep.subr.mxu0 %v194_v8  ;;  %1215 = vmatpush3.msra.mxu1 %v296_v11  ;;  %v287_v30 = vld [vmem:[#allocation7 + $0x18] sm:$0xff]  ;;  %v284_v33 = vld [vmem:[#allocation7] sm:$0xff]  ;;  %v398_v35 = vld [vmem:[#allocation8 + $0x70] sm:$0xff] }
  0x7d   :  { %1184 = vmatpush3.msra.mxu0 %v194_v8  ;;  %1216 = vmatprep.subr.mxu1 %v295_v13  ;;  %v399_v34 = vld [vmem:[#allocation8 + $0x78] sm:$0xff]  ;;  %v397_v36 = vld [vmem:[#allocation8 + $0x68] sm:$0xff]  ;;  %v396_v37 = vld [vmem:[#allocation8 + $0x60] sm:$0xff] }
  0x7e   :  { %1185 = vmatprep.subr.mxu0 %v193_v10  ;;  %1217 = vmatpush3.msra.mxu1 %v295_v13  ;;  %v395_v38 = vld [vmem:[#allocation8 + $0x58] sm:$0xff]  ;;  %v394_v39 = vld [vmem:[#allocation8 + $0x50] sm:$0xff]  ;;  %v393_v40 = vld [vmem:[#allocation8 + $0x48] sm:$0xff] }
  0x7f   :  { %1186 = vmatpush3.msra.mxu0 %v193_v10  ;;  %1218 = vmatprep.subr.mxu1 %v294_v15  ;;  %v392_v41 = vld [vmem:[#allocation8 + $0x40] sm:$0xff]  ;;  %v391_v42 = vld [vmem:[#allocation8 + $0x38] sm:$0xff]  ;;  %v390_v43 = vld [vmem:[#allocation8 + $0x30] sm:$0xff] }
  0x80   :  { %1187 = vmatprep.subr.mxu0 %v192_v12  ;;  %1219 = vmatpush3.msra.mxu1 %v294_v15  ;;  %v389_v44 = vld [vmem:[#allocation8 + $0x28] sm:$0xff]  ;;  %v388_v45 = vld [vmem:[#allocation8 + $0x20] sm:$0xff]  ;;  %v1021_v46 = vld [vmem:[%s1922_s13] ss:$0 sm:$0xff] }
  0x81   :  { %1188 = vmatpush3.msra.mxu0 %v192_v12  ;;  %1220 = vmatprep.subr.mxu1 %v293_v17  ;;  %v387_v53 = vld [vmem:[#allocation8 + $0x18] sm:$0xff]  ;;  %v386_v54 = vld [vmem:[#allocation8 + $0x10] sm:$0xff]  ;;  %v385_v55 = vld [vmem:[#allocation8 + $0x8] sm:$0xff] }
  0x82   :  { %1189 = vmatprep.subr.mxu0 %v191_v14  ;;  %1221 = vmatpush3.msra.mxu1 %v293_v17  ;;  %v384_v56 = vld [vmem:[#allocation8] sm:$0xff]  ;;  %v499_v57 = vld [vmem:[#allocation10 + $0x78] sm:$0xff]  ;;  %v498_v58 = vld [vmem:[#allocation10 + $0x70] sm:$0xff] }
  0x83   :  { %1190 = vmatpush3.msra.mxu0 %v191_v14  ;;  %1222 = vmatprep.subr.mxu1 %v292_v19  ;;  %v497_v59 = vld [vmem:[#allocation10 + $0x68] sm:$0xff]  ;;  %v496_v60 = vld [vmem:[#allocation10 + $0x60] sm:$0xff]  ;;  %v495_v61 = vld [vmem:[#allocation10 + $0x58] sm:$0xff] }
  0x84   :  { %1191 = vmatprep.subr.mxu0 %v190_v16  ;;  %1223 = vmatpush3.msra.mxu1 %v292_v19  ;;  %v494_v62 = vld [vmem:[#allocation10 + $0x50] sm:$0xff]  ;;  %v493_v63 = vld [vmem:[#allocation10 + $0x48] sm:$0xff]  ;;  %v492_v0 = vld [vmem:[#allocation10 + $0x40] sm:$0xff] }
  0x85   :  { %1192 = vmatpush3.msra.mxu0 %v190_v16  ;;  %1224 = vmatprep.subr.mxu1 %v291_v21  ;;  %v491_v1 = vld [vmem:[#allocation10 + $0x38] sm:$0xff]  ;;  %v490_v2 = vld [vmem:[#allocation10 + $0x30] sm:$0xff]  ;;  %v489_v3 = vld [vmem:[#allocation10 + $0x28] sm:$0xff] }
  0x86   :  { %1193 = vmatprep.subr.mxu0 %v189_v18  ;;  %1225 = vmatpush3.msra.mxu1 %v291_v21  ;;  %v488_v4 = vld [vmem:[#allocation10 + $0x20] sm:$0xff]  ;;  %v1022_v5 = vld [vmem:[%s1902_s4] ss:$0 sm:$0xff]  ;;  %v487_v12 = vld [vmem:[#allocation10 + $0x18] sm:$0xff] }
  0x87   :  { %1194 = vmatpush3.msra.mxu0 %v189_v18  ;;  %1226 = vmatprep.subr.mxu1 %v290_v23  ;;  %v486_v13 = vld [vmem:[#allocation10 + $0x10] sm:$0xff]  ;;  %v485_v14 = vld [vmem:[#allocation10 + $0x8] sm:$0xff]  ;;  %v484_v15 = vld [vmem:[#allocation10] sm:$0xff] }
  0x88   :  { %1195 = vmatprep.subr.mxu0 %v188_v20  ;;  %1227 = vmatpush3.msra.mxu1 %v290_v23  ;;  %v599_v16 = vld [vmem:[#allocation11 + $0x78] sm:$0xff]  ;;  %v598_v17 = vld [vmem:[#allocation11 + $0x70] sm:$0xff]  ;;  %v597_v18 = vld [vmem:[#allocation11 + $0x68] sm:$0xff] }
  0x89   :  { %1196 = vmatpush3.msra.mxu0 %v188_v20  ;;  %1228 = vmatprep.subr.mxu1 %v289_v25  ;;  %v596_v19 = vld [vmem:[#allocation11 + $0x60] sm:$0xff]  ;;  %v595_v20 = vld [vmem:[#allocation11 + $0x58] sm:$0xff]  ;;  %v594_v21 = vld [vmem:[#allocation11 + $0x50] sm:$0xff] }
  0x8a   :  { %1197 = vmatprep.subr.mxu0 %v187_v22  ;;  %1229 = vmatpush3.msra.mxu1 %v289_v25  ;;  %v592_v23 = vld [vmem:[#allocation11 + $0x40] sm:$0xff]  ;;  %v590_v25 = vld [vmem:[#allocation11 + $0x30] sm:$0xff] }
  0x8b   :  { %1198 = vmatpush3.msra.mxu0 %v187_v22  ;;  %1230 = vmatprep.subr.mxu1 %v288_v27  ;;  %v593_v22 = vld [vmem:[#allocation11 + $0x48] sm:$0xff] }
  0x8c   :  { %1199 = vmatprep.subr.mxu0 %v186_v24  ;;  %1231 = vmatpush3.msra.mxu1 %v288_v27  ;;  %v588_v27 = vld [vmem:[#allocation11 + $0x20] sm:$0xff] }
  0x8d   :  { %1200 = vmatpush3.msra.mxu0 %v186_v24  ;;  %1232 = vmatprep.subr.mxu1 %v287_v30  ;;  %v591_v24 = vld [vmem:[#allocation11 + $0x38] sm:$0xff] }
  0x8e   :  { %1201 = vmatprep.subr.mxu0 %v185_v26  ;;  %1233 = vmatpush3.msra.mxu1 %v287_v30 }
  0x8f   :  { %1202 = vmatpush3.msra.mxu0 %v185_v26  ;;  %1234 = vmatprep.subr.mxu1 %v286_v31  ;;  %v589_v26 = vld [vmem:[#allocation11 + $0x28] sm:$0xff] }
  0x90   :  { %1203 = vmatprep.subr.mxu0 %v184_v28  ;;  %1235 = vmatpush3.msra.mxu1 %v286_v31 }
  0x91   :  { %1204 = vmatpush3.msra.mxu0 %v184_v28  ;;  %1236 = vmatprep.subr.mxu1 %v285_v32  ;;  %v587_v28 = vld [vmem:[#allocation11 + $0x18] sm:$0xff] }
  0x92   :  { %1206 = vmatmul.mubr.f32.vlgmr.msra.gmra.mxu0 %v183_v29  ;;  %1237 = vmatpush3.msra.mxu1 %v285_v32  ;;  %v1023_v29 = vld [vmem:[%s1904_s6] ss:$0 sm:$0xff] }
  0x93   :  { %1238 = vmatprep.subr.mxu1 %v284_v33  ;;  %1243 = vmatprep.subr.mxu0 %v399_v34 }
  0x94   :  { %1239 = vmatpush3.msra.mxu1 %v284_v33  ;;  %1244 = vmatpush3.msra.mxu0 %v399_v34 }
  0x95   :  { %1245 = vmatprep.subr.mxu0 %v398_v35  ;;  %1278 = vmatprep.subr.mxu1 %v499_v57 }
  0x96   :  { %1246 = vmatpush3.msra.mxu0 %v398_v35 }
  0x97   :  { %1247 = vmatprep.subr.mxu0 %v397_v36 }
  0x98   :  { %1248 = vmatpush3.msra.mxu0 %v397_v36  ;;  %v586_v36 = vld [vmem:[#allocation11 + $0x10] sm:$0xff] }
  0x99   :  { %1249 = vmatprep.subr.mxu0 %v396_v37 }
  0x9a   :  { %1250 = vmatpush3.msra.mxu0 %v396_v37  ;;  %v585_v37 = vld [vmem:[#allocation11 + $0x8] sm:$0xff] }
  0x9b   :  { %1251 = vmatprep.subr.mxu0 %v395_v38 }
  0x9c   :  { %1252 = vmatpush3.msra.mxu0 %v395_v38  ;;  %v584_v38 = vld [vmem:[#allocation11] sm:$0xff] }
  0x9d   :  { %1253 = vmatprep.subr.mxu0 %v394_v39 }
  0x9e   :  { %1254 = vmatpush3.msra.mxu0 %v394_v39  ;;  %v699_v39 = vld [vmem:[#allocation13 + $0x78] sm:$0xff] }
  0x9f   :  { %1255 = vmatprep.subr.mxu0 %v393_v40 }
  0xa0   :  { %1256 = vmatpush3.msra.mxu0 %v393_v40  ;;  %v698_v40 = vld [vmem:[#allocation13 + $0x70] sm:$0xff] }
  0xa1   :  { %1257 = vmatprep.subr.mxu0 %v392_v41 }
  0xa2   :  { %1258 = vmatpush3.msra.mxu0 %v392_v41  ;;  %v697_v41 = vld [vmem:[#allocation13 + $0x68] sm:$0xff] }
  0xa3   :  { %1259 = vmatprep.subr.mxu0 %v391_v42 }
  0xa4   :  { %1260 = vmatpush3.msra.mxu0 %v391_v42  ;;  %v696_v42 = vld [vmem:[#allocation13 + $0x60] sm:$0xff] }
  0xa5   :  { %1261 = vmatprep.subr.mxu0 %v390_v43 }
  0xa6   :  { %1262 = vmatpush3.msra.mxu0 %v390_v43  ;;  %v695_v43 = vld [vmem:[#allocation13 + $0x58] sm:$0xff] }
  0xa7   :  { %1263 = vmatprep.subr.mxu0 %v389_v44 }
  0xa8   :  { %1264 = vmatpush3.msra.mxu0 %v389_v44  ;;  %v694_v44 = vld [vmem:[#allocation13 + $0x50] sm:$0xff] }
  0xa9   :  { %1265 = vmatprep.subr.mxu0 %v388_v45 }
  0xaa   :  { %1266 = vmatpush3.msra.mxu0 %v388_v45  ;;  %v693_v45 = vld [vmem:[#allocation13 + $0x48] sm:$0xff] }
  0xab   :  { %1267 = vmatprep.subr.mxu0 %v387_v53 }
  0xac   :  { %1268 = vmatpush3.msra.mxu0 %v387_v53 }
  0xad   :  { %1269 = vmatprep.subr.mxu0 %v386_v54 }
  0xae   :  { %1270 = vmatpush3.msra.mxu0 %v386_v54 }
  0xaf   :  { %1271 = vmatprep.subr.mxu0 %v385_v55 }
  0xb0   :  { %1272 = vmatpush3.msra.mxu0 %v385_v55 }
  0xb1   :  { %1273 = vmatprep.subr.mxu0 %v384_v56 }
  0xb2   :  { %1274 = vmatpush3.msra.mxu0 %v384_v56  ;;  %v687_v56 = vld [vmem:[#allocation13 + $0x18] sm:$0xff] }
  0xb3   :  { %1313 = vmatprep.subr.mxu0 %v599_v16 }
 0x152   :  { %v1207_v47 = vpop.f32.mrf.mxu0 }
 0x153   :  { %v279_v48 = vadd.f32 %v1207_v47, %v1021_v46  ;;  %v691_v47 = vld [vmem:[#allocation13 + $0x38] sm:$0xff] }
 0x154   :  { %v273_v49 = vpop.f32.mrf.mxu0 }
 0x155   :  { %v274_v50 = vadd.f32 %v1021_v46, %v273_v49  ;;  %v283_v52 = vmax.f32 %v279_v48, 0.0  ;;  %v692_v46 = vld [vmem:[#allocation13 + $0x40] sm:$0xff]  ;;  %v690_v48 = vld [vmem:[#allocation13 + $0x30] sm:$0xff]  ;;  %v689_v49 = vld [vmem:[#allocation13 + $0x28] sm:$0xff] }
 0x157   :  { %v282_v51 = vmax.f32 %v274_v50, 0.0  ;;  %v688_v50 = vld [vmem:[#allocation13 + $0x20] sm:$0xff] }
 0x159   :  { %1240 = vmatprep.mubr.f32.mxu1 %v282_v51  ;;  %v1024_v51 = vld [vmem:[%s1906_s8] ss:$0 sm:$0xff] }
 0x15a   :  { %1241 = vmatmul.mubr.f32.vlgmr.msra.gmra.mxu1 %v283_v52 }
 0x15b   :  { %1279 = vmatpush3.msra.mxu1 %v499_v57  ;;  %v686_v57 = vld [vmem:[#allocation13 + $0x10] sm:$0xff] }
 0x15c   :  { %1280 = vmatprep.subr.mxu1 %v498_v58 }
 0x15d   :  { %1281 = vmatpush3.msra.mxu1 %v498_v58  ;;  %v685_v58 = vld [vmem:[#allocation13 + $0x8] sm:$0xff] }
 0x15e   :  { %1282 = vmatprep.subr.mxu1 %v497_v59 }
 0x15f   :  { %1283 = vmatpush3.msra.mxu1 %v497_v59  ;;  %v684_v59 = vld [vmem:[#allocation13] sm:$0xff] }
 0x160   :  { %1284 = vmatprep.subr.mxu1 %v496_v60 }
 0x161   :  { %1285 = vmatpush3.msra.mxu1 %v496_v60  ;;  %v799_v60 = vld [vmem:[#allocation14 + $0x78] sm:$0xff] }
 0x162   :  { %1286 = vmatprep.subr.mxu1 %v495_v61 }
 0x163   :  { %1287 = vmatpush3.msra.mxu1 %v495_v61  ;;  %v798_v61 = vld [vmem:[#allocation14 + $0x70] sm:$0xff] }
 0x164   :  { %1288 = vmatprep.subr.mxu1 %v494_v62 }
 0x165   :  { %1289 = vmatpush3.msra.mxu1 %v494_v62  ;;  %v797_v62 = vld [vmem:[#allocation14 + $0x68] sm:$0xff] }
 0x166   :  { %1290 = vmatprep.subr.mxu1 %v493_v63 }
 0x167   :  { %1291 = vmatpush3.msra.mxu1 %v493_v63  ;;  %v796_v63 = vld [vmem:[#allocation14 + $0x60] sm:$0xff] }
 0x168   :  { %1292 = vmatprep.subr.mxu1 %v492_v0 }
 0x169   :  { %1293 = vmatpush3.msra.mxu1 %v492_v0  ;;  %v795_v0 = vld [vmem:[#allocation14 + $0x58] sm:$0xff] }
 0x16a   :  { %1294 = vmatprep.subr.mxu1 %v491_v1 }
 0x16b   :  { %1295 = vmatpush3.msra.mxu1 %v491_v1  ;;  %v794_v1 = vld [vmem:[#allocation14 + $0x50] sm:$0xff] }
 0x16c   :  { %1296 = vmatprep.subr.mxu1 %v490_v2 }
 0x16d   :  { %1297 = vmatpush3.msra.mxu1 %v490_v2  ;;  %v793_v2 = vld [vmem:[#allocation14 + $0x48] sm:$0xff] }
 0x16e   :  { %1298 = vmatprep.subr.mxu1 %v489_v3 }
 0x16f   :  { %1299 = vmatpush3.msra.mxu1 %v489_v3  ;;  %v792_v3 = vld [vmem:[#allocation14 + $0x40] sm:$0xff] }
 0x170   :  { %1300 = vmatprep.subr.mxu1 %v488_v4 }
 0x171   :  { %1301 = vmatpush3.msra.mxu1 %v488_v4  ;;  %v791_v4 = vld [vmem:[#allocation14 + $0x38] sm:$0xff] }
 0x172   :  { %1302 = vmatprep.subr.mxu1 %v487_v12 }
 0x173   :  { %1303 = vmatpush3.msra.mxu1 %v487_v12 }
 0x174   :  { %1304 = vmatprep.subr.mxu1 %v486_v13 }
 0x175   :  { %1305 = vmatpush3.msra.mxu1 %v486_v13 }
 0x176   :  { %1306 = vmatprep.subr.mxu1 %v485_v14 }
 0x177   :  { %1307 = vmatpush3.msra.mxu1 %v485_v14 }
 0x178   :  { %1308 = vmatprep.subr.mxu1 %v484_v15 }
 0x179   :  { %1309 = vmatpush3.msra.mxu1 %v484_v15  ;;  %v787_v15 = vld [vmem:[#allocation14 + $0x18] sm:$0xff] }
 0x17a   :  { %1348 = vmatprep.subr.mxu1 %v699_v39 }
 0x21a   :  { %v1242_v6 = vpop.f32.mrf.mxu1 }
 0x21b   :  { %v379_v7 = vadd.f32 %v1242_v6, %v1022_v5  ;;  %v789_v6 = vld [vmem:[#allocation14 + $0x28] sm:$0xff] }
 0x21c   :  { %v373_v8 = vpop.f32.mrf.mxu1 }
 0x21d   :  { %v374_v9 = vadd.f32 %v1022_v5, %v373_v8  ;;  %v383_v11 = vmax.f32 %v379_v7, 0.0  ;;  %v790_v5 = vld [vmem:[#allocation14 + $0x30] sm:$0xff]  ;;  %v788_v7 = vld [vmem:[#allocation14 + $0x20] sm:$0xff] }
 0x21e   :  { %v1025_v8 = vld [vmem:[%s1908_s10] ss:$0 sm:$0xff] }
 0x21f   :  { %v382_v10 = vmax.f32 %v374_v9, 0.0 }
 0x221   :  { %1275 = vmatprep.mubr.f32.mxu0 %v382_v10 }
 0x222   :  { %1276 = vmatmul.mubr.f32.vlgmr.msra.gmra.mxu0 %v383_v11 }
 0x223   :  { %1314 = vmatpush3.msra.mxu0 %v599_v16  ;;  %v786_v16 = vld [vmem:[#allocation14 + $0x10] sm:$0xff] }
 0x224   :  { %1315 = vmatprep.subr.mxu0 %v598_v17 }
 0x225   :  { %1316 = vmatpush3.msra.mxu0 %v598_v17  ;;  %v785_v17 = vld [vmem:[#allocation14 + $0x8] sm:$0xff] }
 0x226   :  { %1317 = vmatprep.subr.mxu0 %v597_v18 }
 0x227   :  { %1318 = vmatpush3.msra.mxu0 %v597_v18  ;;  %v784_v18 = vld [vmem:[#allocation14] sm:$0xff] }
 0x228   :  { %1319 = vmatprep.subr.mxu0 %v596_v19 }
 0x229   :  { %1320 = vmatpush3.msra.mxu0 %v596_v19  ;;  %v899_v19 = vld [vmem:[#allocation16 + $0x78] sm:$0xff] }
 0x22a   :  { %1321 = vmatprep.subr.mxu0 %v595_v20 }
 0x22b   :  { %1322 = vmatpush3.msra.mxu0 %v595_v20  ;;  %v898_v20 = vld [vmem:[#allocation16 + $0x70] sm:$0xff] }
 0x22c   :  { %1323 = vmatprep.subr.mxu0 %v594_v21 }
 0x22d   :  { %1324 = vmatpush3.msra.mxu0 %v594_v21  ;;  %v897_v21 = vld [vmem:[#allocation16 + $0x68] sm:$0xff] }
 0x22e   :  { %1325 = vmatprep.subr.mxu0 %v593_v22 }
 0x22f   :  { %1326 = vmatpush3.msra.mxu0 %v593_v22  ;;  %v896_v22 = vld [vmem:[#allocation16 + $0x60] sm:$0xff] }
 0x230   :  { %1327 = vmatprep.subr.mxu0 %v592_v23 }
 0x231   :  { %1328 = vmatpush3.msra.mxu0 %v592_v23  ;;  %v895_v23 = vld [vmem:[#allocation16 + $0x58] sm:$0xff] }
 0x232   :  { %1329 = vmatprep.subr.mxu0 %v591_v24 }
 0x233   :  { %1330 = vmatpush3.msra.mxu0 %v591_v24  ;;  %v894_v24 = vld [vmem:[#allocation16 + $0x50] sm:$0xff] }
 0x234   :  { %1331 = vmatprep.subr.mxu0 %v590_v25 }
 0x235   :  { %1332 = vmatpush3.msra.mxu0 %v590_v25  ;;  %v893_v25 = vld [vmem:[#allocation16 + $0x48] sm:$0xff] }
 0x236   :  { %1333 = vmatprep.subr.mxu0 %v589_v26 }
 0x237   :  { %1334 = vmatpush3.msra.mxu0 %v589_v26  ;;  %v892_v26 = vld [vmem:[#allocation16 + $0x40] sm:$0xff] }
 0x238   :  { %1335 = vmatprep.subr.mxu0 %v588_v27 }
 0x239   :  { %1336 = vmatpush3.msra.mxu0 %v588_v27  ;;  %v891_v27 = vld [vmem:[#allocation16 + $0x38] sm:$0xff] }
 0x23a   :  { %1337 = vmatprep.subr.mxu0 %v587_v28 }
 0x23b   :  { %1338 = vmatpush3.msra.mxu0 %v587_v28  ;;  %v890_v28 = vld [vmem:[#allocation16 + $0x30] sm:$0xff] }
 0x23c   :  { %1339 = vmatprep.subr.mxu0 %v586_v36 }
 0x23d   :  { %1340 = vmatpush3.msra.mxu0 %v586_v36 }
 0x23e   :  { %1341 = vmatprep.subr.mxu0 %v585_v37 }
 0x23f   :  { %1342 = vmatpush3.msra.mxu0 %v585_v37 }
 0x240   :  { %1343 = vmatprep.subr.mxu0 %v584_v38 }
 0x241   :  { %1344 = vmatpush3.msra.mxu0 %v584_v38  ;;  %v887_v38 = vld [vmem:[#allocation16 + $0x18] sm:$0xff] }
 0x242   :  { %1383 = vmatprep.subr.mxu0 %v799_v60 }
 0x2e2   :  { %v1277_v30 = vpop.f32.mrf.mxu0 }
 0x2e3   :  { %v479_v31 = vadd.f32 %v1277_v30, %v1023_v29  ;;  %v888_v30 = vld [vmem:[#allocation16 + $0x20] sm:$0xff] }
 0x2e4   :  { %v473_v32 = vpop.f32.mrf.mxu0 }
 0x2e5   :  { %v474_v33 = vadd.f32 %v1023_v29, %v473_v32  ;;  %v483_v35 = vmax.f32 %v479_v31, 0.0  ;;  %v889_v29 = vld [vmem:[#allocation16 + $0x28] sm:$0xff]  ;;  %v1026_v31 = vld [vmem:[%s1910_s12] ss:$0 sm:$0xff] }
 0x2e7   :  { %v482_v34 = vmax.f32 %v474_v33, 0.0 }
 0x2e9   :  { %1310 = vmatprep.mubr.f32.mxu1 %v482_v34 }
 0x2ea   :  { %1311 = vmatmul.mubr.f32.vlgmr.msra.gmra.mxu1 %v483_v35 }
 0x2eb   :  { %1349 = vmatpush3.msra.mxu1 %v699_v39  ;;  %v886_v39 = vld [vmem:[#allocation16 + $0x10] sm:$0xff] }
 0x2ec   :  { %1350 = vmatprep.subr.mxu1 %v698_v40 }
 0x2ed   :  { %1351 = vmatpush3.msra.mxu1 %v698_v40  ;;  %v885_v40 = vld [vmem:[#allocation16 + $0x8] sm:$0xff] }
 0x2ee   :  { %1352 = vmatprep.subr.mxu1 %v697_v41 }
 0x2ef   :  { %1353 = vmatpush3.msra.mxu1 %v697_v41  ;;  %v884_v41 = vld [vmem:[#allocation16] sm:$0xff] }
 0x2f0   :  { %1354 = vmatprep.subr.mxu1 %v696_v42 }
 0x2f1   :  { %1355 = vmatpush3.msra.mxu1 %v696_v42  ;;  %v1027_v42 = vld [vmem:[%s1912_s14] ss:$0 sm:$0xff] }
 0x2f2   :  { %1356 = vmatprep.subr.mxu1 %v695_v43 }
 0x2f3   :  { %1357 = vmatpush3.msra.mxu1 %v695_v43 }
 0x2f4   :  { %1358 = vmatprep.subr.mxu1 %v694_v44 }
 0x2f5   :  { %1359 = vmatpush3.msra.mxu1 %v694_v44 }
 0x2f6   :  { %1360 = vmatprep.subr.mxu1 %v693_v45 }
 0x2f7   :  { %1361 = vmatpush3.msra.mxu1 %v693_v45 }
 0x2f8   :  { %1362 = vmatprep.subr.mxu1 %v692_v46 }
 0x2f9   :  { %1363 = vmatpush3.msra.mxu1 %v692_v46 }
 0x2fa   :  { %1364 = vmatprep.subr.mxu1 %v691_v47 }
 0x2fb   :  { %1365 = vmatpush3.msra.mxu1 %v691_v47 }
 0x2fc   :  { %1366 = vmatprep.subr.mxu1 %v690_v48 }
 0x2fd   :  { %1367 = vmatpush3.msra.mxu1 %v690_v48 }
 0x2fe   :  { %1368 = vmatprep.subr.mxu1 %v689_v49 }
 0x2ff   :  { %1369 = vmatpush3.msra.mxu1 %v689_v49 }
 0x300   :  { %1370 = vmatprep.subr.mxu1 %v688_v50 }
 0x301   :  { %1371 = vmatpush3.msra.mxu1 %v688_v50 }
 0x302   :  { %1372 = vmatprep.subr.mxu1 %v687_v56 }
 0x303   :  { %1373 = vmatpush3.msra.mxu1 %v687_v56 }
 0x304   :  { %1374 = vmatprep.subr.mxu1 %v686_v57 }
 0x305   :  { %1375 = vmatpush3.msra.mxu1 %v686_v57 }
 0x306   :  { %1376 = vmatprep.subr.mxu1 %v685_v58 }
 0x307   :  { %1377 = vmatpush3.msra.mxu1 %v685_v58 }
 0x308   :  { %1378 = vmatprep.subr.mxu1 %v684_v59 }
 0x309   :  { %1379 = vmatpush3.msra.mxu1 %v684_v59 }
 0x30a   :  { %1418 = vmatprep.subr.mxu1 %v899_v19 }
 0x3aa   :  { %v1312_v52 = vpop.f32.mrf.mxu1 }
 0x3ab   :  { %v579_v53 = vadd.f32 %v1312_v52, %v1024_v51 }
 0x3ac   :  { %v573_v54 = vpop.f32.mrf.mxu1 }
 0x3ad   :  { %583 = vst [vmem:[#allocation18 + $0x8] sm:$0xff] %v579_v53  ;;  %v574_v55 = vadd.f32 %v1024_v51, %v573_v54 }
 0x3af   :  { %582 = vst [vmem:[#allocation18] sm:$0xff] %v574_v55  ;;  %1345 = vmatprep.mubr.f32.mxu0 %v574_v55 }
 0x3b0   :  { %1346 = vmatmul.mubr.f32.vlgmr.msra.gmra.mxu0 %v579_v53 }
 0x3b1   :  { %1384 = vmatpush3.msra.mxu0 %v799_v60 }
 0x3b2   :  { %1385 = vmatprep.subr.mxu0 %v798_v61 }
 0x3b3   :  { %1386 = vmatpush3.msra.mxu0 %v798_v61 }
 0x3b4   :  { %1387 = vmatprep.subr.mxu0 %v797_v62 }
 0x3b5   :  { %1388 = vmatpush3.msra.mxu0 %v797_v62 }
 0x3b6   :  { %1389 = vmatprep.subr.mxu0 %v796_v63 }
 0x3b7   :  { %1390 = vmatpush3.msra.mxu0 %v796_v63 }
 0x3b8   :  { %1391 = vmatprep.subr.mxu0 %v795_v0 }
 0x3b9   :  { %1392 = vmatpush3.msra.mxu0 %v795_v0 }
 0x3ba   :  { %1393 = vmatprep.subr.mxu0 %v794_v1 }
 0x3bb   :  { %1394 = vmatpush3.msra.mxu0 %v794_v1 }
 0x3bc   :  { %1395 = vmatprep.subr.mxu0 %v793_v2 }
 0x3bd   :  { %1396 = vmatpush3.msra.mxu0 %v793_v2 }
 0x3be   :  { %1397 = vmatprep.subr.mxu0 %v792_v3 }
 0x3bf   :  { %1398 = vmatpush3.msra.mxu0 %v792_v3 }
 0x3c0   :  { %1399 = vmatprep.subr.mxu0 %v791_v4 }
 0x3c1   :  { %1400 = vmatpush3.msra.mxu0 %v791_v4 }
 0x3c2   :  { %1401 = vmatprep.subr.mxu0 %v790_v5 }
 0x3c3   :  { %1402 = vmatpush3.msra.mxu0 %v790_v5 }
 0x3c4   :  { %1403 = vmatprep.subr.mxu0 %v789_v6 }
 0x3c5   :  { %1404 = vmatpush3.msra.mxu0 %v789_v6 }
 0x3c6   :  { %1405 = vmatprep.subr.mxu0 %v788_v7 }
 0x3c7   :  { %1406 = vmatpush3.msra.mxu0 %v788_v7 }
 0x3c8   :  { %1407 = vmatprep.subr.mxu0 %v787_v15 }
 0x3c9   :  { %1408 = vmatpush3.msra.mxu0 %v787_v15 }
 0x3ca   :  { %1409 = vmatprep.subr.mxu0 %v786_v16 }
 0x3cb   :  { %1410 = vmatpush3.msra.mxu0 %v786_v16 }
 0x3cc   :  { %1411 = vmatprep.subr.mxu0 %v785_v17 }
 0x3cd   :  { %1412 = vmatpush3.msra.mxu0 %v785_v17 }
 0x3ce   :  { %1413 = vmatprep.subr.mxu0 %v784_v18 }
 0x3cf   :  { %1414 = vmatpush3.msra.mxu0 %v784_v18 }
 0x470   :  { %v1347_v9 = vpop.f32.mrf.mxu0 }
 0x471   :  { %v679_v10 = vadd.f32 %v1347_v9, %v1025_v8 }
 0x472   :  { %v673_v11 = vpop.f32.mrf.mxu0 }
 0x473   :  { %v674_v12 = vadd.f32 %v1025_v8, %v673_v11  ;;  %v683_v14 = vmax.f32 %v679_v10, 0.0 }
 0x475   :  { %v682_v13 = vmax.f32 %v674_v12, 0.0 }
 0x477   :  { %1380 = vmatprep.mubr.f32.mxu1 %v682_v13 }
 0x478   :  { %1381 = vmatmul.mubr.f32.vlgmr.msra.gmra.mxu1 %v683_v14 }
 0x479   :  { %1419 = vmatpush3.msra.mxu1 %v899_v19 }
 0x47a   :  { %1420 = vmatprep.subr.mxu1 %v898_v20 }
 0x47b   :  { %1421 = vmatpush3.msra.mxu1 %v898_v20 }
 0x47c   :  { %1422 = vmatprep.subr.mxu1 %v897_v21 }
 0x47d   :  { %1423 = vmatpush3.msra.mxu1 %v897_v21 }
 0x47e   :  { %1424 = vmatprep.subr.mxu1 %v896_v22 }
 0x47f   :  { %1425 = vmatpush3.msra.mxu1 %v896_v22 }
 0x480   :  { %1426 = vmatprep.subr.mxu1 %v895_v23 }
 0x481   :  { %1427 = vmatpush3.msra.mxu1 %v895_v23 }
 0x482   :  { %1428 = vmatprep.subr.mxu1 %v894_v24 }
 0x483   :  { %1429 = vmatpush3.msra.mxu1 %v894_v24 }
 0x484   :  { %1430 = vmatprep.subr.mxu1 %v893_v25 }
 0x485   :  { %1431 = vmatpush3.msra.mxu1 %v893_v25 }
 0x486   :  { %1432 = vmatprep.subr.mxu1 %v892_v26 }
 0x487   :  { %1433 = vmatpush3.msra.mxu1 %v892_v26 }
 0x488   :  { %1434 = vmatprep.subr.mxu1 %v891_v27 }
 0x489   :  { %1435 = vmatpush3.msra.mxu1 %v891_v27 }
 0x48a   :  { %1436 = vmatprep.subr.mxu1 %v890_v28 }
 0x48b   :  { %1437 = vmatpush3.msra.mxu1 %v890_v28 }
 0x48c   :  { %1438 = vmatprep.subr.mxu1 %v889_v29 }
 0x48d   :  { %1439 = vmatpush3.msra.mxu1 %v889_v29 }
 0x48e   :  { %1440 = vmatprep.subr.mxu1 %v888_v30 }
 0x48f   :  { %1441 = vmatpush3.msra.mxu1 %v888_v30 }
 0x490   :  { %1442 = vmatprep.subr.mxu1 %v887_v38 }
 0x491   :  { %1443 = vmatpush3.msra.mxu1 %v887_v38 }
 0x492   :  { %1444 = vmatprep.subr.mxu1 %v886_v39 }
 0x493   :  { %1445 = vmatpush3.msra.mxu1 %v886_v39 }
 0x494   :  { %1446 = vmatprep.subr.mxu1 %v885_v40 }
 0x495   :  { %1447 = vmatpush3.msra.mxu1 %v885_v40 }
 0x496   :  { %1448 = vmatprep.subr.mxu1 %v884_v41 }
 0x497   :  { %1449 = vmatpush3.msra.mxu1 %v884_v41 }
 0x538   :  { %v1382_v32 = vpop.f32.mrf.mxu1 }
 0x539   :  { %v779_v33 = vadd.f32 %v1382_v32, %v1026_v31 }
 0x53a   :  { %v773_v34 = vpop.f32.mrf.mxu1 }
 0x53b   :  { %v774_v35 = vadd.f32 %v1026_v31, %v773_v34  ;;  %v783_v37 = vmax.f32 %v779_v33, 0.0 }
 0x53d   :  { %v782_v36 = vmax.f32 %v774_v35, 0.0 }
 0x53f   :  { %1415 = vmatprep.mubr.f32.mxu0 %v782_v36 }
 0x540   :  { %1416 = vmatmul.mubr.f32.vlgmr.msra.gmra.mxu0 %v783_v37 }
 0x600   :  { %v1417_v43 = vpop.f32.mrf.mxu0 }
 0x601   :  { %v879_v44 = vadd.f32 %v1417_v43, %v1027_v42 }
 0x602   :  { %v873_v45 = vpop.f32.mrf.mxu0 }
 0x603   :  { %v874_v46 = vadd.f32 %v1027_v42, %v873_v45  ;;  %v883_v48 = vmax.f32 %v879_v44, 0.0 }
 0x605   :  { %v882_v47 = vmax.f32 %v874_v46, 0.0 }
 0x607   :  { %1450 = vmatprep.mubr.f32.mxu1 %v882_v47 }
 0x608   :  { %1451 = vmatmul.mubr.f32.vlgmr.msra.gmra.mxu1 %v883_v48 }
 0x609   :  { %1657 = shalt.err (!%p1654_p7)
}
 0x60a   :  { %1007 = dma.vmem_to_hbm [thread:$0]  %s1002_s2, 256, %s1916_s18, [#allocation19], %s1702_s19, %s1702_s19, %s1703_s1  }
 0x60b   :  { %v1028_v49 = vld [vmem:[%s1914_s16] ss:$0 sm:$0xff]  ;;  %s1712_s25 = smov [#allocation17]  }
 0x60c   :  { %s989_s26 = sshll.u32 %s1712_s25, 4  ;;  %s990_s26 = int_to_ptr.vmem [resolvable:$true] %s989_s26 }
 0x60d   :  { %s1666_s7 = scalar_lea.vmem %s990_s26, 256  ;;  %p1671_p9 = scmp.lt.s32.totalorder %s990_s26, %s990_s26 }
 0x60e   :  { %p1667_p8 = scmp.ne.s32.totalorder %s990_s26, %s1666_s7  ;;  %p1672_p10 = scmp.lt.s32.totalorder %s1666_s7, %s1666_s7 }
 0x610   :  { %p1673_p11 = por %p1672_p10, %p1671_p9 }
 0x612   :  { %p1674_p12 = pnand %p1673_p11, %p1667_p8 }
 0x6c8   :  { %v1452_v50 = vpop.f32.mrf.mxu1 }
 0x6c9   :  { %v979_v51 = vadd.f32 %v1452_v50, %v1028_v49 }
 0x6ca   :  { %v973_v52 = vpop.f32.mrf.mxu1 }
 0x6cb   :  { %983 = vst [vmem:[#allocation17 + $0x8] sm:$0xff] %v979_v51  ;;  %v974_v53 = vadd.f32 %v1028_v49, %v973_v52 }
 0x6cd   :  { %982 = vst [vmem:[#allocation17] sm:$0xff] %v974_v53 }
 0x6ce   :  { %1677 = shalt.err (!%p1674_p12)
}
 0x6cf   :  { %995 = dma.vmem_to_hbm [thread:$0]  %s990_s26, 256, %s1915_s17, [#allocation4], %s1702_s19, %s1702_s19, %s1703_s1  }
 0x6d0   :  { %1696 = dma.done.wait [#allocation4], 256  }
 0x6d1   :  { %1697 = vsyncadd [#allocation4], 4294967040 }
 0x6d2   :  { %1698 = dma.done.wait [#allocation19], 256  }
 0x6d3   :  { %1699 = vsyncadd [#allocation19], 4294967040 }
 0x6d4   :  { %1014 = vsyncpa [#allocation3], 1 }
 0x6d5   :  { %1015 = vsyncpa [#allocation6], 1 }
 0x6d6   :  { %1016 = vsyncpa [#allocation9], 1 }
 0x6d7   :  { %1017 = vsyncpa [#allocation12], 1 }
 0x6d8   :  { %1018 = vsyncpa [#allocation15], 1 }
 0x6d9   :  { %1019 = vsyncpa [#allocation4], 1 }
 0x6da   :  { %1020 = vsyncpa [#allocation19], 1 }

// kernel: tpu_custom_call.1
= control target key start
LH: loop header
LB: loop body
LE: loop exit
PB: predicated region body
PF: predicated region fallthrough
CT: control target
= control target key end

     0   :  { %s1898_s0 = inlined_call_operand.hbm [shape: f32[16,128], index: 0, kind: input, shape index: {}]   ;;  %s1899_s1 = inlined_call_operand.hbm [shape: f32[128,128], index: 1, kind: input, shape index: {}]   ;;  %s1900_s2 = inlined_call_operand.vmem [shape: f32[1,128], index: 2, kind: input, shape index: {}]   ;;  %s1901_s3 = inlined_call_operand.hbm [shape: f32[128,128], index: 3, kind: input, shape index: {}]   ;;  %s1902_s4 = inlined_call_operand.vmem [shape: f32[1,128], index: 4, kind: input, shape index: {}]   ;;  %s1903_s5 = inlined_call_operand.hbm [shape: f32[128,128], index: 5, kind: input, shape index: {}]   ;;  %s1904_s6 = inlined_call_operand.vmem [shape: f32[1,128], index: 6, kind: input, shape index: {}]   ;;  %s1905_s7 = inlined_call_operand.hbm [shape: f32[128,128], index: 7, kind: input, shape index: {}]   ;;  %s1906_s8 = inlined_call_operand.vmem [shape: f32[1,128], index: 8, kind: input, shape index: {}]   ;;  %s1907_s9 = inlined_call_operand.hbm [shape: f32[128,128], index: 9, kind: input, shape index: {}]   ;;  %s1908_s10 = inlined_call_operand.vmem [shape: f32[1,128], index: 10, kind: input, shape index: {}]   ;;  %s1909_s11 = inlined_call_operand.hbm [shape: f32[128,128], index: 11, kind: input, shape index: {}]   ;;  %s1910_s12 = inlined_call_operand.vmem [shape: f32[1,128], index: 12, kind: input, shape index: {}]   ;;  %s1911_s13 = inlined_call_operand.hbm [shape: f32[128,128], index: 13, kind: input, shape index: {}]   ;;  %s1912_s14 = inlined_call_operand.vmem [shape: f32[1,128], index: 14, kind: input, shape index: {}]   ;;  %s1913_s15 = inlined_call_operand.hbm [shape: f32[128,128], index: 15, kind: input, shape index: {}]   ;;  %s1914_s16 = inlined_call_operand.vmem [shape: f32[1,128], index: 16, kind: input, shape index: {}]   ;;  %s1915_s17 = inlined_call_operand.hbm [shape: f32[16,128], index: 17, kind: output, shape index: {0}]   ;;  %s1916_s18 = inlined_call_operand.hbm [shape: f32[16,128], index: 18, kind: output, shape index: {1}]  }
   0x1   :  { %1917 = sst [smem:[#allocation27_spill]] %s1898_s0 }
   0x2   :  { %1918 = sst [smem:[#allocation28_spill]] %s1899_s1 }
   0x3   :  { %1919 = sst [smem:[#allocation29_spill]] %s1900_s2 }
   0x4   :  { %24 = vsyncpa [#allocation3], 0 }
   0x5   :  { %25 = vsyncpa [#allocation6], 0 }
   0x6   :  { %26 = vsyncpa [#allocation9], 0 }
   0x7   :  { %27 = vsyncpa [#allocation12], 0 }
   0x8   :  { %28 = vsyncpa [#allocation15], 0 }
   0x9   :  { %29 = vsyncpa [#allocation4], 0 }
   0xa   :  { %30 = vsyncpa [#allocation19], 0  ;;  %s1700_s27 = smov [#allocation5]   ;;  %s1701_s29 = smov [#allocation8]  }
   0xb   :  { %s48_s28 = sshll.u32 %s1700_s27, 4  ;;  %s76_s30 = sshll.u32 %s1701_s29, 4  ;;  %s49_s28 = int_to_ptr.vmem [resolvable:$true] %s48_s28  ;;  %s77_s30 = int_to_ptr.vmem [resolvable:$true] %s76_s30 }
   0xc   :  { %s1474_s0 = scalar_lea.vmem %s49_s28, 2048  ;;  %p1479_p1 = scmp.lt.s32.totalorder %s49_s28, %s49_s28 }
   0xd   :  { %p1475_p0 = scmp.ne.s32.totalorder %s49_s28, %s1474_s0  ;;  %p1480_p2 = scmp.lt.s32.totalorder %s1474_s0, %s1474_s0 }
   0xf   :  { %p1481_p3 = por %p1480_p2, %p1479_p1 }
  0x11   :  { %p1482_p4 = pnand %p1481_p3, %p1475_p0 }
  0x13   :  { %1485 = shalt.err (!%p1482_p4)
}
  0x14   :  { %s1702_s19 = smov 128   ;;  %s1703_s1 = smov 8  }
  0x15   :  { %s1920_s22 = sld [smem:[#allocation28_spill]]  ;;  %s1494_s2 = scalar_lea.vmem %s77_s30, 2048 }
  0x16   :  { %p1495_p5 = scmp.ne.s32.totalorder %s77_s30, %s1494_s2  ;;  %p1499_p6 = scmp.lt.s32.totalorder %s77_s30, %s77_s30 }
  0x17   :  { %p1500_p7 = scmp.lt.s32.totalorder %s1494_s2, %s1494_s2 }
  0x19   :  { %p1501_p8 = por %p1500_p7, %p1499_p6 }
  0x1b   :  { %54 = dma.hbm_to_vmem [thread:$0]  %s1920_s22, 2048, %s49_s28, [#allocation6], %s1702_s19, %s1702_s19, %s1703_s1  }
  0x1c   :  { %p1502_p9 = pnand %p1501_p8, %p1495_p5 }
  0x1e   :  { %1505 = shalt.err (!%p1502_p9)
}
  0x1f   :  { %82 = dma.hbm_to_vmem [thread:$0]  %s1903_s5, 2048, %s77_s30, [#allocation9], %s1702_s19, %s1702_s19, %s1703_s1  }
  0x20   :  { %s1704_s25 = smov [#allocation11]   ;;  %s1705_s27 = smov [#allocation14]  }
  0x21   :  { %s104_s26 = sshll.u32 %s1704_s25, 4  ;;  %s132_s29 = sshll.u32 %s1705_s27, 4  ;;  %s105_s26 = int_to_ptr.vmem [resolvable:$true] %s104_s26  ;;  %s133_s29 = int_to_ptr.vmem [resolvable:$true] %s132_s29 }
  0x22   :  { %s1514_s28 = scalar_lea.vmem %s105_s26, 2048  ;;  %p1519_p11 = scmp.lt.s32.totalorder %s105_s26, %s105_s26 }
  0x23   :  { %p1515_p10 = scmp.ne.s32.totalorder %s105_s26, %s1514_s28  ;;  %p1520_p12 = scmp.lt.s32.totalorder %s1514_s28, %s1514_s28 }
  0x25   :  { %p1521_p13 = por %p1520_p12, %p1519_p11 }
  0x27   :  { %p1522_p0 = pnand %p1521_p13, %p1515_p10 }
  0x29   :  { %1525 = shalt.err (!%p1522_p0)
}
  0x2a   :  { %110 = dma.hbm_to_vmem [thread:$0]  %s1907_s9, 2048, %s105_s26, [#allocation12], %s1702_s19, %s1702_s19, %s1703_s1  }
  0x2b   :  { %s1534_s5 = scalar_lea.vmem %s133_s29, 2048  ;;  %p1539_p2 = scmp.lt.s32.totalorder %s133_s29, %s133_s29 }
  0x2c   :  { %p1535_p1 = scmp.ne.s32.totalorder %s133_s29, %s1534_s5  ;;  %p1540_p3 = scmp.lt.s32.totalorder %s1534_s5, %s1534_s5 }
  0x2e   :  { %p1541_p4 = por %p1540_p3, %p1539_p2 }
  0x30   :  { %p1542_p5 = pnand %p1541_p4, %p1535_p1 }
  0x32   :  { %1545 = shalt.err (!%p1542_p5)
}
  0x33   :  { %138 = dma.hbm_to_vmem [thread:$0]  %s1911_s13, 2048, %s133_s29, [#allocation15], %s1702_s19, %s1702_s19, %s1703_s1  }
  0x34   :  { %s1706_s22 = smov [#allocation2]   ;;  %s1707_s23 = smov [#allocation7]  }
  0x35   :  { %s36_s2 = sshll.u32 %s1706_s22, 4  ;;  %s62_s24 = sshll.u32 %s1707_s23, 4  ;;  %s37_s2 = int_to_ptr.vmem [resolvable:$true] %s36_s2  ;;  %s63_s24 = int_to_ptr.vmem [resolvable:$true] %s62_s24 }
  0x36   :  { %s1554_s9 = scalar_lea.vmem %s37_s2, 256  ;;  %p1559_p7 = scmp.lt.s32.totalorder %s37_s2, %s37_s2 }
  0x37   :  { %p1555_p6 = scmp.ne.s32.totalorder %s37_s2, %s1554_s9  ;;  %p1560_p8 = scmp.lt.s32.totalorder %s1554_s9, %s1554_s9 }
  0x39   :  { %p1561_p9 = por %p1560_p8, %p1559_p7 }
  0x3b   :  { %p1562_p10 = pnand %p1561_p9, %p1555_p6 }
  0x3d   :  { %1565 = shalt.err (!%p1562_p10)
}
  0x3e   :  { %s1921_s27 = sld [smem:[#allocation27_spill]]  ;;  %s1574_s13 = scalar_lea.vmem %s63_s24, 2048 }
  0x3f   :  { %p1575_p11 = scmp.ne.s32.totalorder %s63_s24, %s1574_s13  ;;  %p1579_p12 = scmp.lt.s32.totalorder %s63_s24, %s63_s24 }
  0x40   :  { %p1580_p13 = scmp.lt.s32.totalorder %s1574_s13, %s1574_s13 }
  0x42   :  { %p1581_p0 = por %p1580_p13, %p1579_p12 }
  0x44   :  { %42 = dma.hbm_to_vmem [thread:$0]  %s1921_s27, 256, %s37_s2, [#allocation3], %s1702_s19, %s1702_s19, %s1703_s1  }
  0x45   :  { %p1582_p1 = pnand %p1581_p0, %p1575_p11 }
  0x47   :  { %1585 = shalt.err (!%p1582_p1)
}
  0x48   :  { %68 = dma.hbm_to_vmem [thread:$0]  %s1901_s3, 2048, %s63_s24, [#allocation6], %s1702_s19, %s1702_s19, %s1703_s1  }
  0x49   :  { %s1708_s0 = smov [#allocation10]   ;;  %s1709_s5 = smov [#allocation13]  }
  0x4a   :  { %s90_s20 = sshll.u32 %s1708_s0, 4  ;;  %s118_s30 = sshll.u32 %s1709_s5, 4  ;;  %s91_s20 = int_to_ptr.vmem [resolvable:$true] %s90_s20  ;;  %s119_s30 = int_to_ptr.vmem [resolvable:$true] %s118_s30 }
  0x4b   :  { %s1594_s21 = scalar_lea.vmem %s91_s20, 2048  ;;  %p1599_p3 = scmp.lt.s32.totalorder %s91_s20, %s91_s20 }
  0x4c   :  { %p1595_p2 = scmp.ne.s32.totalorder %s91_s20, %s1594_s21  ;;  %p1600_p4 = scmp.lt.s32.totalorder %s1594_s21, %s1594_s21 }
  0x4e   :  { %p1601_p5 = por %p1600_p4, %p1599_p3 }
  0x50   :  { %p1602_p6 = pnand %p1601_p5, %p1595_p2 }
  0x52   :  { %1605 = shalt.err (!%p1602_p6)
}
  0x53   :  { %96 = dma.hbm_to_vmem [thread:$0]  %s1905_s7, 2048, %s91_s20, [#allocation9], %s1702_s19, %s1702_s19, %s1703_s1  }
  0x54   :  { %s1614_s3 = scalar_lea.vmem %s119_s30, 2048  ;;  %p1619_p8 = scmp.lt.s32.totalorder %s119_s30, %s119_s30 }
  0x55   :  { %p1615_p7 = scmp.ne.s32.totalorder %s119_s30, %s1614_s3  ;;  %p1620_p9 = scmp.lt.s32.totalorder %s1614_s3, %s1614_s3 }
  0x57   :  { %p1621_p10 = por %p1620_p9, %p1619_p8 }
  0x59   :  { %p1622_p11 = pnand %p1621_p10, %p1615_p7 }
  0x5b   :  { %1625 = shalt.err (!%p1622_p11)
}
  0x5c   :  { %124 = dma.hbm_to_vmem [thread:$0]  %s1909_s11, 2048, %s119_s30, [#allocation12], %s1702_s19, %s1702_s19, %s1703_s1  }
  0x5d   :  { %s1710_s9 = smov [#allocation16]  }
  0x5e   :  { %s146_s25 = sshll.u32 %s1710_s9, 4  ;;  %s147_s25 = int_to_ptr.vmem [resolvable:$true] %s146_s25 }
  0x5f   :  { %s1634_s26 = scalar_lea.vmem %s147_s25, 2048  ;;  %p1639_p13 = scmp.lt.s32.totalorder %s147_s25, %s147_s25 }
  0x60   :  { %p1635_p12 = scmp.ne.s32.totalorder %s147_s25, %s1634_s26  ;;  %p1640_p0 = scmp.lt.s32.totalorder %s1634_s26, %s1634_s26 }
  0x62   :  { %p1641_p1 = por %p1640_p0, %p1639_p13 }
  0x64   :  { %p1642_p2 = pnand %p1641_p1, %p1635_p12 }
  0x66   :  { %1645 = shalt.err (!%p1642_p2)
}
  0x67   :  { %152 = dma.hbm_to_vmem [thread:$0]  %s1913_s15, 2048, %s147_s25, [#allocation15], %s1702_s19, %s1702_s19, %s1703_s1  }
  0x68   :  { %1686 = dma.done.wait [#allocation3], 256  }
  0x69   :  { %1687 = vsyncadd [#allocation3], 4294967040 }
  0x6a   :  { %1688 = dma.done.wait [#allocation6], 4096  }
  0x6b   :  { %1689 = vsyncadd [#allocation6], 4294963200 }
  0x6c   :  { %1690 = dma.done.wait [#allocation9], 4096  }
  0x6d   :  { %1691 = vsyncadd [#allocation9], 4294963200 }
  0x6e   :  { %1692 = dma.done.wait [#allocation12], 4096  }
  0x6f   :  { %1693 = vsyncadd [#allocation12], 4294963200 }
  0x70   :  { %1694 = dma.done.wait [#allocation15], 4096  }
  0x71   :  { %1695 = vsyncadd [#allocation15], 4294963200  ;;  %v199_v0 = vld [vmem:[#allocation5 + $0x78] sm:$0xff]  ;;  %v198_v1 = vld [vmem:[#allocation5 + $0x70] sm:$0xff]  ;;  %s1922_s13 = sld [smem:[#allocation29_spill]]  ;;  %s1711_s22 = smov [#allocation18]  }
  0x72   :  { %1173 = vmatprep.subr.mxu0 %v199_v0  ;;  %v197_v2 = vld [vmem:[#allocation5 + $0x68] sm:$0xff]  ;;  %v196_v3 = vld [vmem:[#allocation5 + $0x60] sm:$0xff]  ;;  %v182_v4 = vld [vmem:[#allocation2] sm:$0xff]  ;;  %s1001_s2 = sshll.u32 %s1711_s22, 4  ;;  %s1002_s2 = int_to_ptr.vmem [resolvable:$true] %s1001_s2 }
  0x73   :  { %1174 = vmatpush3.msra.mxu0 %v199_v0  ;;  %v195_v5 = vld [vmem:[#allocation5 + $0x58] sm:$0xff]  ;;  %1205 = vmatprep.mubr.f32.mxu0 %v182_v4  ;;  %v298_v7 = vld [vmem:[#allocation7 + $0x70] sm:$0xff]  ;;  %v297_v9 = vld [vmem:[#allocation7 + $0x68] sm:$0xff]  ;;  %s1646_s3 = scalar_lea.vmem %s1002_s2, 256  ;;  %p1651_p4 = scmp.lt.s32.totalorder %s1002_s2, %s1002_s2 }
  0x74   :  { %1175 = vmatprep.subr.mxu0 %v198_v1  ;;  %v299_v6 = vld [vmem:[#allocation7 + $0x78] sm:$0xff]  ;;  %v194_v8 = vld [vmem:[#allocation5 + $0x50] sm:$0xff]  ;;  %v193_v10 = vld [vmem:[#allocation5 + $0x48] sm:$0xff]  ;;  %p1647_p3 = scmp.ne.s32.totalorder %s1002_s2, %s1646_s3  ;;  %p1652_p5 = scmp.lt.s32.totalorder %s1646_s3, %s1646_s3 }
  0x75   :  { %1176 = vmatpush3.msra.mxu0 %v198_v1  ;;  %1208 = vmatprep.subr.mxu1 %v299_v6  ;;  %v296_v11 = vld [vmem:[#allocation7 + $0x60] sm:$0xff]  ;;  %v295_v13 = vld [vmem:[#allocation7 + $0x58] sm:$0xff]  ;;  %v294_v15 = vld [vmem:[#allocation7 + $0x50] sm:$0xff] }
  0x76   :  { %1177 = vmatprep.subr.mxu0 %v197_v2  ;;  %1209 = vmatpush3.msra.mxu1 %v299_v6  ;;  %v192_v12 = vld [vmem:[#allocation5 + $0x40] sm:$0xff]  ;;  %v191_v14 = vld [vmem:[#allocation5 + $0x38] sm:$0xff]  ;;  %v190_v16 = vld [vmem:[#allocation5 + $0x30] sm:$0xff]  ;;  %p1653_p6 = por %p1652_p5, %p1651_p4 }
  0x77   :  { %1178 = vmatpush3.msra.mxu0 %v197_v2  ;;  %1210 = vmatprep.subr.mxu1 %v298_v7  ;;  %v293_v17 = vld [vmem:[#allocation7 + $0x48] sm:$0xff]  ;;  %v292_v19 = vld [vmem:[#allocation7 + $0x40] sm:$0xff]  ;;  %v291_v21 = vld [vmem:[#allocation7 + $0x38] sm:$0xff] }
  0x78   :  { %1179 = vmatprep.subr.mxu0 %v196_v3  ;;  %1211 = vmatpush3.msra.mxu1 %v298_v7  ;;  %v189_v18 = vld [vmem:[#allocation5 + $0x28] sm:$0xff]  ;;  %v188_v20 = vld [vmem:[#allocation5 + $0x20] sm:$0xff]  ;;  %v187_v22 = vld [vmem:[#allocation5 + $0x18] sm:$0xff]  ;;  %p1654_p7 = pnand %p1653_p6, %p1647_p3 }
  0x79   :  { %1180 = vmatpush3.msra.mxu0 %v196_v3  ;;  %1212 = vmatprep.subr.mxu1 %v297_v9  ;;  %v290_v23 = vld [vmem:[#allocation7 + $0x30] sm:$0xff]  ;;  %v289_v25 = vld [vmem:[#allocation7 + $0x28] sm:$0xff]  ;;  %v288_v27 = vld [vmem:[#allocation7 + $0x20] sm:$0xff] }
  0x7a   :  { %1181 = vmatprep.subr.mxu0 %v195_v5  ;;  %1213 = vmatpush3.msra.mxu1 %v297_v9  ;;  %v186_v24 = vld [vmem:[#allocation5 + $0x10] sm:$0xff]  ;;  %v185_v26 = vld [vmem:[#allocation5 + $0x8] sm:$0xff]  ;;  %v184_v28 = vld [vmem:[#allocation5] sm:$0xff] }
  0x7b   :  { %1182 = vmatpush3.msra.mxu0 %v195_v5  ;;  %1214 = vmatprep.subr.mxu1 %v296_v11  ;;  %v183_v29 = vld [vmem:[#allocation2 + $0x8] sm:$0xff]  ;;  %v286_v31 = vld [vmem:[#allocation7 + $0x10] sm:$0xff]  ;;  %v285_v32 = vld [vmem:[#allocation7 + $0x8] sm:$0xff] }
  0x7c   :  { %1183 = vmatprep.subr.mxu0 %v194_v8  ;;  %1215 = vmatpush3.msra.mxu1 %v296_v11  ;;  %v287_v30 = vld [vmem:[#allocation7 + $0x18] sm:$0xff]  ;;  %v284_v33 = vld [vmem:[#allocation7] sm:$0xff]  ;;  %v398_v35 = vld [vmem:[#allocation8 + $0x70] sm:$0xff] }
  0x7d   :  { %1184 = vmatpush3.msra.mxu0 %v194_v8  ;;  %1216 = vmatprep.subr.mxu1 %v295_v13  ;;  %v399_v34 = vld [vmem:[#allocation8 + $0x78] sm:$0xff]  ;;  %v397_v36 = vld [vmem:[#allocation8 + $0x68] sm:$0xff]  ;;  %v396_v37 = vld [vmem:[#allocation8 + $0x60] sm:$0xff] }
  0x7e   :  { %1185 = vmatprep.subr.mxu0 %v193_v10  ;;  %1217 = vmatpush3.msra.mxu1 %v295_v13  ;;  %v395_v38 = vld [vmem:[#allocation8 + $0x58] sm:$0xff]  ;;  %v394_v39 = vld [vmem:[#allocation8 + $0x50] sm:$0xff]  ;;  %v393_v40 = vld [vmem:[#allocation8 + $0x48] sm:$0xff] }
  0x7f   :  { %1186 = vmatpush3.msra.mxu0 %v193_v10  ;;  %1218 = vmatprep.subr.mxu1 %v294_v15  ;;  %v392_v41 = vld [vmem:[#allocation8 + $0x40] sm:$0xff]  ;;  %v391_v42 = vld [vmem:[#allocation8 + $0x38] sm:$0xff]  ;;  %v390_v43 = vld [vmem:[#allocation8 + $0x30] sm:$0xff] }
  0x80   :  { %1187 = vmatprep.subr.mxu0 %v192_v12  ;;  %1219 = vmatpush3.msra.mxu1 %v294_v15  ;;  %v389_v44 = vld [vmem:[#allocation8 + $0x28] sm:$0xff]  ;;  %v388_v45 = vld [vmem:[#allocation8 + $0x20] sm:$0xff]  ;;  %v1021_v46 = vld [vmem:[%s1922_s13] ss:$0 sm:$0xff] }
  0x81   :  { %1188 = vmatpush3.msra.mxu0 %v192_v12  ;;  %1220 = vmatprep.subr.mxu1 %v293_v17  ;;  %v387_v53 = vld [vmem:[#allocation8 + $0x18] sm:$0xff]  ;;  %v386_v54 = vld [vmem:[#allocation8 + $0x10] sm:$0xff]  ;;  %v385_v55 = vld [vmem:[#allocation8 + $0x8] sm:$0xff] }
  0x82   :  { %1189 = vmatprep.subr.mxu0 %v191_v14  ;;  %1221 = vmatpush3.msra.mxu1 %v293_v17  ;;  %v384_v56 = vld [vmem:[#allocation8] sm:$0xff]  ;;  %v499_v57 = vld [vmem:[#allocation10 + $0x78] sm:$0xff]  ;;  %v498_v58 = vld [vmem:[#allocation10 + $0x70] sm:$0xff] }
  0x83   :  { %1190 = vmatpush3.msra.mxu0 %v191_v14  ;;  %1222 = vmatprep.subr.mxu1 %v292_v19  ;;  %v497_v59 = vld [vmem:[#allocation10 + $0x68] sm:$0xff]  ;;  %v496_v60 = vld [vmem:[#allocation10 + $0x60] sm:$0xff]  ;;  %v495_v61 = vld [vmem:[#allocation10 + $0x58] sm:$0xff] }
  0x84   :  { %1191 = vmatprep.subr.mxu0 %v190_v16  ;;  %1223 = vmatpush3.msra.mxu1 %v292_v19  ;;  %v494_v62 = vld [vmem:[#allocation10 + $0x50] sm:$0xff]  ;;  %v493_v63 = vld [vmem:[#allocation10 + $0x48] sm:$0xff]  ;;  %v492_v0 = vld [vmem:[#allocation10 + $0x40] sm:$0xff] }
  0x85   :  { %1192 = vmatpush3.msra.mxu0 %v190_v16  ;;  %1224 = vmatprep.subr.mxu1 %v291_v21  ;;  %v491_v1 = vld [vmem:[#allocation10 + $0x38] sm:$0xff]  ;;  %v490_v2 = vld [vmem:[#allocation10 + $0x30] sm:$0xff]  ;;  %v489_v3 = vld [vmem:[#allocation10 + $0x28] sm:$0xff] }
  0x86   :  { %1193 = vmatprep.subr.mxu0 %v189_v18  ;;  %1225 = vmatpush3.msra.mxu1 %v291_v21  ;;  %v488_v4 = vld [vmem:[#allocation10 + $0x20] sm:$0xff]  ;;  %v1022_v5 = vld [vmem:[%s1902_s4] ss:$0 sm:$0xff]  ;;  %v487_v12 = vld [vmem:[#allocation10 + $0x18] sm:$0xff] }
  0x87   :  { %1194 = vmatpush3.msra.mxu0 %v189_v18  ;;  %1226 = vmatprep.subr.mxu1 %v290_v23  ;;  %v486_v13 = vld [vmem:[#allocation10 + $0x10] sm:$0xff]  ;;  %v485_v14 = vld [vmem:[#allocation10 + $0x8] sm:$0xff]  ;;  %v484_v15 = vld [vmem:[#allocation10] sm:$0xff] }
  0x88   :  { %1195 = vmatprep.subr.mxu0 %v188_v20  ;;  %1227 = vmatpush3.msra.mxu1 %v290_v23  ;;  %v599_v16 = vld [vmem:[#allocation11 + $0x78] sm:$0xff]  ;;  %v598_v17 = vld [vmem:[#allocation11 + $0x70] sm:$0xff]  ;;  %v597_v18 = vld [vmem:[#allocation11 + $0x68] sm:$0xff] }
  0x89   :  { %1196 = vmatpush3.msra.mxu0 %v188_v20  ;;  %1228 = vmatprep.subr.mxu1 %v289_v25  ;;  %v596_v19 = vld [vmem:[#allocation11 + $0x60] sm:$0xff]  ;;  %v595_v20 = vld [vmem:[#allocation11 + $0x58] sm:$0xff]  ;;  %v594_v21 = vld [vmem:[#allocation11 + $0x50] sm:$0xff] }
  0x8a   :  { %1197 = vmatprep.subr.mxu0 %v187_v22  ;;  %1229 = vmatpush3.msra.mxu1 %v289_v25  ;;  %v592_v23 = vld [vmem:[#allocation11 + $0x40] sm:$0xff]  ;;  %v590_v25 = vld [vmem:[#allocation11 + $0x30] sm:$0xff] }
  0x8b   :  { %1198 = vmatpush3.msra.mxu0 %v187_v22  ;;  %1230 = vmatprep.subr.mxu1 %v288_v27  ;;  %v593_v22 = vld [vmem:[#allocation11 + $0x48] sm:$0xff] }
  0x8c   :  { %1199 = vmatprep.subr.mxu0 %v186_v24  ;;  %1231 = vmatpush3.msra.mxu1 %v288_v27  ;;  %v588_v27 = vld [vmem:[#allocation11 + $0x20] sm:$0xff] }
  0x8d   :  { %1200 = vmatpush3.msra.mxu0 %v186_v24  ;;  %1232 = vmatprep.subr.mxu1 %v287_v30  ;;  %v591_v24 = vld [vmem:[#allocation11 + $0x38] sm:$0xff] }
  0x8e   :  { %1201 = vmatprep.subr.mxu0 %v185_v26  ;;  %1233 = vmatpush3.msra.mxu1 %v287_v30 }
  0x8f   :  { %1202 = vmatpush3.msra.mxu0 %v185_v26  ;;  %1234 = vmatprep.subr.mxu1 %v286_v31  ;;  %v589_v26 = vld [vmem:[#allocation11 + $0x28] sm:$0xff] }
  0x90   :  { %1203 = vmatprep.subr.mxu0 %v184_v28  ;;  %1235 = vmatpush3.msra.mxu1 %v286_v31 }
  0x91   :  { %1204 = vmatpush3.msra.mxu0 %v184_v28  ;;  %1236 = vmatprep.subr.mxu1 %v285_v32  ;;  %v587_v28 = vld [vmem:[#allocation11 + $0x18] sm:$0xff] }
  0x92   :  { %1206 = vmatmul.mubr.f32.vlgmr.msra.gmra.mxu0 %v183_v29  ;;  %1237 = vmatpush3.msra.mxu1 %v285_v32  ;;  %v1023_v29 = vld [vmem:[%s1904_s6] ss:$0 sm:$0xff] }
  0x93   :  { %1238 = vmatprep.subr.mxu1 %v284_v33  ;;  %1243 = vmatprep.subr.mxu0 %v399_v34 }
  0x94   :  { %1239 = vmatpush3.msra.mxu1 %v284_v33  ;;  %1244 = vmatpush3.msra.mxu0 %v399_v34 }
  0x95   :  { %1245 = vmatprep.subr.mxu0 %v398_v35  ;;  %1278 = vmatprep.subr.mxu1 %v499_v57 }
  0x96   :  { %1246 = vmatpush3.msra.mxu0 %v398_v35 }
  0x97   :  { %1247 = vmatprep.subr.mxu0 %v397_v36 }
  0x98   :  { %1248 = vmatpush3.msra.mxu0 %v397_v36  ;;  %v586_v36 = vld [vmem:[#allocation11 + $0x10] sm:$0xff] }
  0x99   :  { %1249 = vmatprep.subr.mxu0 %v396_v37 }
  0x9a   :  { %1250 = vmatpush3.msra.mxu0 %v396_v37  ;;  %v585_v37 = vld [vmem:[#allocation11 + $0x8] sm:$0xff] }
  0x9b   :  { %1251 = vmatprep.subr.mxu0 %v395_v38 }
  0x9c   :  { %1252 = vmatpush3.msra.mxu0 %v395_v38  ;;  %v584_v38 = vld [vmem:[#allocation11] sm:$0xff] }
  0x9d   :  { %1253 = vmatprep.subr.mxu0 %v394_v39 }
  0x9e   :  { %1254 = vmatpush3.msra.mxu0 %v394_v39  ;;  %v699_v39 = vld [vmem:[#allocation13 + $0x78] sm:$0xff] }
  0x9f   :  { %1255 = vmatprep.subr.mxu0 %v393_v40 }
  0xa0   :  { %1256 = vmatpush3.msra.mxu0 %v393_v40  ;;  %v698_v40 = vld [vmem:[#allocation13 + $0x70] sm:$0xff] }
  0xa1   :  { %1257 = vmatprep.subr.mxu0 %v392_v41 }
  0xa2   :  { %1258 = vmatpush3.msra.mxu0 %v392_v41  ;;  %v697_v41 = vld [vmem:[#allocation13 + $0x68] sm:$0xff] }
  0xa3   :  { %1259 = vmatprep.subr.mxu0 %v391_v42 }
  0xa4   :  { %1260 = vmatpush3.msra.mxu0 %v391_v42  ;;  %v696_v42 = vld [vmem:[#allocation13 + $0x60] sm:$0xff] }
  0xa5   :  { %1261 = vmatprep.subr.mxu0 %v390_v43 }
  0xa6   :  { %1262 = vmatpush3.msra.mxu0 %v390_v43  ;;  %v695_v43 = vld [vmem:[#allocation13 + $0x58] sm:$0xff] }
  0xa7   :  { %1263 = vmatprep.subr.mxu0 %v389_v44 }
  0xa8   :  { %1264 = vmatpush3.msra.mxu0 %v389_v44  ;;  %v694_v44 = vld [vmem:[#allocation13 + $0x50] sm:$0xff] }
  0xa9   :  { %1265 = vmatprep.subr.mxu0 %v388_v45 }
  0xaa   :  { %1266 = vmatpush3.msra.mxu0 %v388_v45  ;;  %v693_v45 = vld [vmem:[#allocation13 + $0x48] sm:$0xff] }
  0xab   :  { %1267 = vmatprep.subr.mxu0 %v387_v53 }
  0xac   :  { %1268 = vmatpush3.msra.mxu0 %v387_v53 }
  0xad   :  { %1269 = vmatprep.subr.mxu0 %v386_v54 }
  0xae   :  { %1270 = vmatpush3.msra.mxu0 %v386_v54 }
  0xaf   :  { %1271 = vmatprep.subr.mxu0 %v385_v55 }
  0xb0   :  { %1272 = vmatpush3.msra.mxu0 %v385_v55 }
  0xb1   :  { %1273 = vmatprep.subr.mxu0 %v384_v56 }
  0xb2   :  { %1274 = vmatpush3.msra.mxu0 %v384_v56  ;;  %v687_v56 = vld [vmem:[#allocation13 + $0x18] sm:$0xff] }
  0xb3   :  { %1313 = vmatprep.subr.mxu0 %v599_v16 }
 0x152   :  { %v1207_v47 = vpop.f32.mrf.mxu0 }
 0x153   :  { %v279_v48 = vadd.f32 %v1207_v47, %v1021_v46  ;;  %v691_v47 = vld [vmem:[#allocation13 + $0x38] sm:$0xff] }
 0x154   :  { %v273_v49 = vpop.f32.mrf.mxu0 }
 0x155   :  { %v274_v50 = vadd.f32 %v1021_v46, %v273_v49  ;;  %v283_v52 = vmax.f32 %v279_v48, 0.0  ;;  %v692_v46 = vld [vmem:[#allocation13 + $0x40] sm:$0xff]  ;;  %v690_v48 = vld [vmem:[#allocation13 + $0x30] sm:$0xff]  ;;  %v689_v49 = vld [vmem:[#allocation13 + $0x28] sm:$0xff] }
 0x157   :  { %v282_v51 = vmax.f32 %v274_v50, 0.0  ;;  %v688_v50 = vld [vmem:[#allocation13 + $0x20] sm:$0xff] }
 0x159   :  { %1240 = vmatprep.mubr.f32.mxu1 %v282_v51  ;;  %v1024_v51 = vld [vmem:[%s1906_s8] ss:$0 sm:$0xff] }
 0x15a   :  { %1241 = vmatmul.mubr.f32.vlgmr.msra.gmra.mxu1 %v283_v52 }
 0x15b   :  { %1279 = vmatpush3.msra.mxu1 %v499_v57  ;;  %v686_v57 = vld [vmem:[#allocation13 + $0x10] sm:$0xff] }
 0x15c   :  { %1280 = vmatprep.subr.mxu1 %v498_v58 }
 0x15d   :  { %1281 = vmatpush3.msra.mxu1 %v498_v58  ;;  %v685_v58 = vld [vmem:[#allocation13 + $0x8] sm:$0xff] }
 0x15e   :  { %1282 = vmatprep.subr.mxu1 %v497_v59 }
 0x15f   :  { %1283 = vmatpush3.msra.mxu1 %v497_v59  ;;  %v684_v59 = vld [vmem:[#allocation13] sm:$0xff] }
 0x160   :  { %1284 = vmatprep.subr.mxu1 %v496_v60 }
 0x161   :  { %1285 = vmatpush3.msra.mxu1 %v496_v60  ;;  %v799_v60 = vld [vmem:[#allocation14 + $0x78] sm:$0xff] }
 0x162   :  { %1286 = vmatprep.subr.mxu1 %v495_v61 }
 0x163   :  { %1287 = vmatpush3.msra.mxu1 %v495_v61  ;;  %v798_v61 = vld [vmem:[#allocation14 + $0x70] sm:$0xff] }
 0x164   :  { %1288 = vmatprep.subr.mxu1 %v494_v62 }
 0x165   :  { %1289 = vmatpush3.msra.mxu1 %v494_v62  ;;  %v797_v62 = vld [vmem:[#allocation14 + $0x68] sm:$0xff] }
 0x166   :  { %1290 = vmatprep.subr.mxu1 %v493_v63 }
 0x167   :  { %1291 = vmatpush3.msra.mxu1 %v493_v63  ;;  %v796_v63 = vld [vmem:[#allocation14 + $0x60] sm:$0xff] }
 0x168   :  { %1292 = vmatprep.subr.mxu1 %v492_v0 }
 0x169   :  { %1293 = vmatpush3.msra.mxu1 %v492_v0  ;;  %v795_v0 = vld [vmem:[#allocation14 + $0x58] sm:$0xff] }
 0x16a   :  { %1294 = vmatprep.subr.mxu1 %v491_v1 }
 0x16b   :  { %1295 = vmatpush3.msra.mxu1 %v491_v1  ;;  %v794_v1 = vld [vmem:[#allocation14 + $0x50] sm:$0xff] }
 0x16c   :  { %1296 = vmatprep.subr.mxu1 %v490_v2 }
 0x16d   :  { %1297 = vmatpush3.msra.mxu1 %v490_v2  ;;  %v793_v2 = vld [vmem:[#allocation14 + $0x48] sm:$0xff] }
 0x16e   :  { %1298 = vmatprep.subr.mxu1 %v489_v3 }
 0x16f   :  { %1299 = vmatpush3.msra.mxu1 %v489_v3  ;;  %v792_v3 = vld [vmem:[#allocation14 + $0x40] sm:$0xff] }
 0x170   :  { %1300 = vmatprep.subr.mxu1 %v488_v4 }
 0x171   :  { %1301 = vmatpush3.msra.mxu1 %v488_v4  ;;  %v791_v4 = vld [vmem:[#allocation14 + $0x38] sm:$0xff] }
 0x172   :  { %1302 = vmatprep.subr.mxu1 %v487_v12 }
 0x173   :  { %1303 = vmatpush3.msra.mxu1 %v487_v12 }
 0x174   :  { %1304 = vmatprep.subr.mxu1 %v486_v13 }
 0x175   :  { %1305 = vmatpush3.msra.mxu1 %v486_v13 }
 0x176   :  { %1306 = vmatprep.subr.mxu1 %v485_v14 }
 0x177   :  { %1307 = vmatpush3.msra.mxu1 %v485_v14 }
 0x178   :  { %1308 = vmatprep.subr.mxu1 %v484_v15 }
 0x179   :  { %1309 = vmatpush3.msra.mxu1 %v484_v15  ;;  %v787_v15 = vld [vmem:[#allocation14 + $0x18] sm:$0xff] }
 0x17a   :  { %1348 = vmatprep.subr.mxu1 %v699_v39 }
 0x21a   :  { %v1242_v6 = vpop.f32.mrf.mxu1 }
 0x21b   :  { %v379_v7 = vadd.f32 %v1242_v6, %v1022_v5  ;;  %v789_v6 = vld [vmem:[#allocation14 + $0x28] sm:$0xff] }
 0x21c   :  { %v373_v8 = vpop.f32.mrf.mxu1 }
 0x21d   :  { %v374_v9 = vadd.f32 %v1022_v5, %v373_v8  ;;  %v383_v11 = vmax.f32 %v379_v7, 0.0  ;;  %v790_v5 = vld [vmem:[#allocation14 + $0x30] sm:$0xff]  ;;  %v788_v7 = vld [vmem:[#allocation14 + $0x20] sm:$0xff] }
 0x21e   :  { %v1025_v8 = vld [vmem:[%s1908_s10] ss:$0 sm:$0xff] }
 0x21f   :  { %v382_v10 = vmax.f32 %v374_v9, 0.0 }
 0x221   :  { %1275 = vmatprep.mubr.f32.mxu0 %v382_v10 }
 0x222   :  { %1276 = vmatmul.mubr.f32.vlgmr.msra.gmra.mxu0 %v383_v11 }
 0x223   :  { %1314 = vmatpush3.msra.mxu0 %v599_v16  ;;  %v786_v16 = vld [vmem:[#allocation14 + $0x10] sm:$0xff] }
 0x224   :  { %1315 = vmatprep.subr.mxu0 %v598_v17 }
 0x225   :  { %1316 = vmatpush3.msra.mxu0 %v598_v17  ;;  %v785_v17 = vld [vmem:[#allocation14 + $0x8] sm:$0xff] }
 0x226   :  { %1317 = vmatprep.subr.mxu0 %v597_v18 }
 0x227   :  { %1318 = vmatpush3.msra.mxu0 %v597_v18  ;;  %v784_v18 = vld [vmem:[#allocation14] sm:$0xff] }
 0x228   :  { %1319 = vmatprep.subr.mxu0 %v596_v19 }
 0x229   :  { %1320 = vmatpush3.msra.mxu0 %v596_v19  ;;  %v899_v19 = vld [vmem:[#allocation16 + $0x78] sm:$0xff] }
 0x22a   :  { %1321 = vmatprep.subr.mxu0 %v595_v20 }
 0x22b   :  { %1322 = vmatpush3.msra.mxu0 %v595_v20  ;;  %v898_v20 = vld [vmem:[#allocation16 + $0x70] sm:$0xff] }
 0x22c   :  { %1323 = vmatprep.subr.mxu0 %v594_v21 }
 0x22d   :  { %1324 = vmatpush3.msra.mxu0 %v594_v21  ;;  %v897_v21 = vld [vmem:[#allocation16 + $0x68] sm:$0xff] }
 0x22e   :  { %1325 = vmatprep.subr.mxu0 %v593_v22 }
 0x22f   :  { %1326 = vmatpush3.msra.mxu0 %v593_v22  ;;  %v896_v22 = vld [vmem:[#allocation16 + $0x60] sm:$0xff] }
 0x230   :  { %1327 = vmatprep.subr.mxu0 %v592_v23 }
 0x231   :  { %1328 = vmatpush3.msra.mxu0 %v592_v23  ;;  %v895_v23 = vld [vmem:[#allocation16 + $0x58] sm:$0xff] }
 0x232   :  { %1329 = vmatprep.subr.mxu0 %v591_v24 }
 0x233   :  { %1330 = vmatpush3.msra.mxu0 %v591_v24  ;;  %v894_v24 = vld [vmem:[#allocation16 + $0x50] sm:$0xff] }
 0x234   :  { %1331 = vmatprep.subr.mxu0 %v590_v25 }
 0x235   :  { %1332 = vmatpush3.msra.mxu0 %v590_v25  ;;  %v893_v25 = vld [vmem:[#allocation16 + $0x48] sm:$0xff] }
 0x236   :  { %1333 = vmatprep.subr.mxu0 %v589_v26 }
 0x237   :  { %1334 = vmatpush3.msra.mxu0 %v589_v26  ;;  %v892_v26 = vld [vmem:[#allocation16 + $0x40] sm:$0xff] }
 0x238   :  { %1335 = vmatprep.subr.mxu0 %v588_v27 }
 0x239   :  { %1336 = vmatpush3.msra.mxu0 %v588_v27  ;;  %v891_v27 = vld [vmem:[#allocation16 + $0x38] sm:$0xff] }
 0x23a   :  { %1337 = vmatprep.subr.mxu0 %v587_v28 }
 0x23b   :  { %1338 = vmatpush3.msra.mxu0 %v587_v28  ;;  %v890_v28 = vld [vmem:[#allocation16 + $0x30] sm:$0xff] }
 0x23c   :  { %1339 = vmatprep.subr.mxu0 %v586_v36 }
 0x23d   :  { %1340 = vmatpush3.msra.mxu0 %v586_v36 }
 0x23e   :  { %1341 = vmatprep.subr.mxu0 %v585_v37 }
 0x23f   :  { %1342 = vmatpush3.msra.mxu0 %v585_v37 }
 0x240   :  { %1343 = vmatprep.subr.mxu0 %v584_v38 }
 0x241   :  { %1344 = vmatpush3.msra.mxu0 %v584_v38  ;;  %v887_v38 = vld [vmem:[#allocation16 + $0x18] sm:$0xff] }
 0x242   :  { %1383 = vmatprep.subr.mxu0 %v799_v60 }
 0x2e2   :  { %v1277_v30 = vpop.f32.mrf.mxu0 }
 0x2e3   :  { %v479_v31 = vadd.f32 %v1277_v30, %v1023_v29  ;;  %v888_v30 = vld [vmem:[#allocation16 + $0x20] sm:$0xff] }
 0x2e4   :  { %v473_v32 = vpop.f32.mrf.mxu0 }
 0x2e5   :  { %v474_v33 = vadd.f32 %v1023_v29, %v473_v32  ;;  %v483_v35 = vmax.f32 %v479_v31, 0.0  ;;  %v889_v29 = vld [vmem:[#allocation16 + $0x28] sm:$0xff]  ;;  %v1026_v31 = vld [vmem:[%s1910_s12] ss:$0 sm:$0xff] }
 0x2e7   :  { %v482_v34 = vmax.f32 %v474_v33, 0.0 }
 0x2e9   :  { %1310 = vmatprep.mubr.f32.mxu1 %v482_v34 }
 0x2ea   :  { %1311 = vmatmul.mubr.f32.vlgmr.msra.gmra.mxu1 %v483_v35 }
 0x2eb   :  { %1349 = vmatpush3.msra.mxu1 %v699_v39  ;;  %v886_v39 = vld [vmem:[#allocation16 + $0x10] sm:$0xff] }
 0x2ec   :  { %1350 = vmatprep.subr.mxu1 %v698_v40 }
 0x2ed   :  { %1351 = vmatpush3.msra.mxu1 %v698_v40  ;;  %v885_v40 = vld [vmem:[#allocation16 + $0x8] sm:$0xff] }
 0x2ee   :  { %1352 = vmatprep.subr.mxu1 %v697_v41 }
 0x2ef   :  { %1353 = vmatpush3.msra.mxu1 %v697_v41  ;;  %v884_v41 = vld [vmem:[#allocation16] sm:$0xff] }
 0x2f0   :  { %1354 = vmatprep.subr.mxu1 %v696_v42 }
 0x2f1   :  { %1355 = vmatpush3.msra.mxu1 %v696_v42  ;;  %v1027_v42 = vld [vmem:[%s1912_s14] ss:$0 sm:$0xff] }
 0x2f2   :  { %1356 = vmatprep.subr.mxu1 %v695_v43 }
 0x2f3   :  { %1357 = vmatpush3.msra.mxu1 %v695_v43 }
 0x2f4   :  { %1358 = vmatprep.subr.mxu1 %v694_v44 }
 0x2f5   :  { %1359 = vmatpush3.msra.mxu1 %v694_v44 }
 0x2f6   :  { %1360 = vmatprep.subr.mxu1 %v693_v45 }
 0x2f7   :  { %1361 = vmatpush3.msra.mxu1 %v693_v45 }
 0x2f8   :  { %1362 = vmatprep.subr.mxu1 %v692_v46 }
 0x2f9   :  { %1363 = vmatpush3.msra.mxu1 %v692_v46 }
 0x2fa   :  { %1364 = vmatprep.subr.mxu1 %v691_v47 }
 0x2fb   :  { %1365 = vmatpush3.msra.mxu1 %v691_v47 }
 0x2fc   :  { %1366 = vmatprep.subr.mxu1 %v690_v48 }
 0x2fd   :  { %1367 = vmatpush3.msra.mxu1 %v690_v48 }
 0x2fe   :  { %1368 = vmatprep.subr.mxu1 %v689_v49 }
 0x2ff   :  { %1369 = vmatpush3.msra.mxu1 %v689_v49 }
 0x300   :  { %1370 = vmatprep.subr.mxu1 %v688_v50 }
 0x301   :  { %1371 = vmatpush3.msra.mxu1 %v688_v50 }
 0x302   :  { %1372 = vmatprep.subr.mxu1 %v687_v56 }
 0x303   :  { %1373 = vmatpush3.msra.mxu1 %v687_v56 }
 0x304   :  { %1374 = vmatprep.subr.mxu1 %v686_v57 }
 0x305   :  { %1375 = vmatpush3.msra.mxu1 %v686_v57 }
 0x306   :  { %1376 = vmatprep.subr.mxu1 %v685_v58 }
 0x307   :  { %1377 = vmatpush3.msra.mxu1 %v685_v58 }
 0x308   :  { %1378 = vmatprep.subr.mxu1 %v684_v59 }
 0x309   :  { %1379 = vmatpush3.msra.mxu1 %v684_v59 }
 0x30a   :  { %1418 = vmatprep.subr.mxu1 %v899_v19 }
 0x3aa   :  { %v1312_v52 = vpop.f32.mrf.mxu1 }
 0x3ab   :  { %v579_v53 = vadd.f32 %v1312_v52, %v1024_v51 }
 0x3ac   :  { %v573_v54 = vpop.f32.mrf.mxu1 }
 0x3ad   :  { %583 = vst [vmem:[#allocation18 + $0x8] sm:$0xff] %v579_v53  ;;  %v574_v55 = vadd.f32 %v1024_v51, %v573_v54 }
 0x3af   :  { %582 = vst [vmem:[#allocation18] sm:$0xff] %v574_v55  ;;  %1345 = vmatprep.mubr.f32.mxu0 %v574_v55 }
 0x3b0   :  { %1346 = vmatmul.mubr.f32.vlgmr.msra.gmra.mxu0 %v579_v53 }
 0x3b1   :  { %1384 = vmatpush3.msra.mxu0 %v799_v60 }
 0x3b2   :  { %1385 = vmatprep.subr.mxu0 %v798_v61 }
 0x3b3   :  { %1386 = vmatpush3.msra.mxu0 %v798_v61 }
 0x3b4   :  { %1387 = vmatprep.subr.mxu0 %v797_v62 }
 0x3b5   :  { %1388 = vmatpush3.msra.mxu0 %v797_v62 }
 0x3b6   :  { %1389 = vmatprep.subr.mxu0 %v796_v63 }
 0x3b7   :  { %1390 = vmatpush3.msra.mxu0 %v796_v63 }
 0x3b8   :  { %1391 = vmatprep.subr.mxu0 %v795_v0 }
 0x3b9   :  { %1392 = vmatpush3.msra.mxu0 %v795_v0 }
 0x3ba   :  { %1393 = vmatprep.subr.mxu0 %v794_v1 }
 0x3bb   :  { %1394 = vmatpush3.msra.mxu0 %v794_v1 }
 0x3bc   :  { %1395 = vmatprep.subr.mxu0 %v793_v2 }
 0x3bd   :  { %1396 = vmatpush3.msra.mxu0 %v793_v2 }
 0x3be   :  { %1397 = vmatprep.subr.mxu0 %v792_v3 }
 0x3bf   :  { %1398 = vmatpush3.msra.mxu0 %v792_v3 }
 0x3c0   :  { %1399 = vmatprep.subr.mxu0 %v791_v4 }
 0x3c1   :  { %1400 = vmatpush3.msra.mxu0 %v791_v4 }
 0x3c2   :  { %1401 = vmatprep.subr.mxu0 %v790_v5 }
 0x3c3   :  { %1402 = vmatpush3.msra.mxu0 %v790_v5 }
 0x3c4   :  { %1403 = vmatprep.subr.mxu0 %v789_v6 }
 0x3c5   :  { %1404 = vmatpush3.msra.mxu0 %v789_v6 }
 0x3c6   :  { %1405 = vmatprep.subr.mxu0 %v788_v7 }
 0x3c7   :  { %1406 = vmatpush3.msra.mxu0 %v788_v7 }
 0x3c8   :  { %1407 = vmatprep.subr.mxu0 %v787_v15 }
 0x3c9   :  { %1408 = vmatpush3.msra.mxu0 %v787_v15 }
 0x3ca   :  { %1409 = vmatprep.subr.mxu0 %v786_v16 }
 0x3cb   :  { %1410 = vmatpush3.msra.mxu0 %v786_v16 }
 0x3cc   :  { %1411 = vmatprep.subr.mxu0 %v785_v17 }
 0x3cd   :  { %1412 = vmatpush3.msra.mxu0 %v785_v17 }
 0x3ce   :  { %1413 = vmatprep.subr.mxu0 %v784_v18 }
 0x3cf   :  { %1414 = vmatpush3.msra.mxu0 %v784_v18 }
 0x470   :  { %v1347_v9 = vpop.f32.mrf.mxu0 }
 0x471   :  { %v679_v10 = vadd.f32 %v1347_v9, %v1025_v8 }
 0x472   :  { %v673_v11 = vpop.f32.mrf.mxu0 }
 0x473   :  { %v674_v12 = vadd.f32 %v1025_v8, %v673_v11  ;;  %v683_v14 = vmax.f32 %v679_v10, 0.0 }
 0x475   :  { %v682_v13 = vmax.f32 %v674_v12, 0.0 }
 0x477   :  { %1380 = vmatprep.mubr.f32.mxu1 %v682_v13 }
 0x478   :  { %1381 = vmatmul.mubr.f32.vlgmr.msra.gmra.mxu1 %v683_v14 }
 0x479   :  { %1419 = vmatpush3.msra.mxu1 %v899_v19 }
 0x47a   :  { %1420 = vmatprep.subr.mxu1 %v898_v20 }
 0x47b   :  { %1421 = vmatpush3.msra.mxu1 %v898_v20 }
 0x47c   :  { %1422 = vmatprep.subr.mxu1 %v897_v21 }
 0x47d   :  { %1423 = vmatpush3.msra.mxu1 %v897_v21 }
 0x47e   :  { %1424 = vmatprep.subr.mxu1 %v896_v22 }
 0x47f   :  { %1425 = vmatpush3.msra.mxu1 %v896_v22 }
 0x480   :  { %1426 = vmatprep.subr.mxu1 %v895_v23 }
 0x481   :  { %1427 = vmatpush3.msra.mxu1 %v895_v23 }
 0x482   :  { %1428 = vmatprep.subr.mxu1 %v894_v24 }
 0x483   :  { %1429 = vmatpush3.msra.mxu1 %v894_v24 }
 0x484   :  { %1430 = vmatprep.subr.mxu1 %v893_v25 }
 0x485   :  { %1431 = vmatpush3.msra.mxu1 %v893_v25 }
 0x486   :  { %1432 = vmatprep.subr.mxu1 %v892_v26 }
 0x487   :  { %1433 = vmatpush3.msra.mxu1 %v892_v26 }
 0x488   :  { %1434 = vmatprep.subr.mxu1 %v891_v27 }
 0x489   :  { %1435 = vmatpush3.msra.mxu1 %v891_v27 }
 0x48a   :  { %1436 = vmatprep.subr.mxu1 %v890_v28 }
 0x48b   :  { %1437 = vmatpush3.msra.mxu1 %v890_v28 }
 0x48c   :  { %1438 = vmatprep.subr.mxu1 %v889_v29 }
 0x48d   :  { %1439 = vmatpush3.msra.mxu1 %v889_v29 }
 0x48e   :  { %1440 = vmatprep.subr.mxu1 %v888_v30 }
 0x48f   :  { %1441 = vmatpush3.msra.mxu1 %v888_v30 }
 0x490   :  { %1442 = vmatprep.subr.mxu1 %v887_v38 }
 0x491   :  { %1443 = vmatpush3.msra.mxu1 %v887_v38 }
 0x492   :  { %1444 = vmatprep.subr.mxu1 %v886_v39 }
 0x493   :  { %1445 = vmatpush3.msra.mxu1 %v886_v39 }
 0x494   :  { %1446 = vmatprep.subr.mxu1 %v885_v40 }
 0x495   :  { %1447 = vmatpush3.msra.mxu1 %v885_v40 }
 0x496   :  { %1448 = vmatprep.subr.mxu1 %v884_v41 }
 0x497   :  { %1449 = vmatpush3.msra.mxu1 %v884_v41 }
 0x538   :  { %v1382_v32 = vpop.f32.mrf.mxu1 }
 0x539   :  { %v779_v33 = vadd.f32 %v1382_v32, %v1026_v31 }
 0x53a   :  { %v773_v34 = vpop.f32.mrf.mxu1 }
 0x53b   :  { %v774_v35 = vadd.f32 %v1026_v31, %v773_v34  ;;  %v783_v37 = vmax.f32 %v779_v33, 0.0 }
 0x53d   :  { %v782_v36 = vmax.f32 %v774_v35, 0.0 }
 0x53f   :  { %1415 = vmatprep.mubr.f32.mxu0 %v782_v36 }
 0x540   :  { %1416 = vmatmul.mubr.f32.vlgmr.msra.gmra.mxu0 %v783_v37 }
 0x600   :  { %v1417_v43 = vpop.f32.mrf.mxu0 }
 0x601   :  { %v879_v44 = vadd.f32 %v1417_v43, %v1027_v42 }
 0x602   :  { %v873_v45 = vpop.f32.mrf.mxu0 }
 0x603   :  { %v874_v46 = vadd.f32 %v1027_v42, %v873_v45  ;;  %v883_v48 = vmax.f32 %v879_v44, 0.0 }
 0x605   :  { %v882_v47 = vmax.f32 %v874_v46, 0.0 }
 0x607   :  { %1450 = vmatprep.mubr.f32.mxu1 %v882_v47 }
 0x608   :  { %1451 = vmatmul.mubr.f32.vlgmr.msra.gmra.mxu1 %v883_v48 }
 0x609   :  { %1657 = shalt.err (!%p1654_p7)
}
 0x60a   :  { %1007 = dma.vmem_to_hbm [thread:$0]  %s1002_s2, 256, %s1916_s18, [#allocation19], %s1702_s19, %s1702_s19, %s1703_s1  }
 0x60b   :  { %v1028_v49 = vld [vmem:[%s1914_s16] ss:$0 sm:$0xff]  ;;  %s1712_s25 = smov [#allocation17]  }
 0x60c   :  { %s989_s26 = sshll.u32 %s1712_s25, 4  ;;  %s990_s26 = int_to_ptr.vmem [resolvable:$true] %s989_s26 }
 0x60d   :  { %s1666_s7 = scalar_lea.vmem %s990_s26, 256  ;;  %p1671_p9 = scmp.lt.s32.totalorder %s990_s26, %s990_s26 }
 0x60e   :  { %p1667_p8 = scmp.ne.s32.totalorder %s990_s26, %s1666_s7  ;;  %p1672_p10 = scmp.lt.s32.totalorder %s1666_s7, %s1666_s7 }
 0x610   :  { %p1673_p11 = por %p1672_p10, %p1671_p9 }
 0x612   :  { %p1674_p12 = pnand %p1673_p11, %p1667_p8 }
 0x6c8   :  { %v1452_v50 = vpop.f32.mrf.mxu1 }
 0x6c9   :  { %v979_v51 = vadd.f32 %v1452_v50, %v1028_v49 }
 0x6ca   :  { %v973_v52 = vpop.f32.mrf.mxu1 }
 0x6cb   :  { %983 = vst [vmem:[#allocation17 + $0x8] sm:$0xff] %v979_v51  ;;  %v974_v53 = vadd.f32 %v1028_v49, %v973_v52 }
 0x6cd   :  { %982 = vst [vmem:[#allocation17] sm:$0xff] %v974_v53 }
 0x6ce   :  { %1677 = shalt.err (!%p1674_p12)
}
 0x6cf   :  { %995 = dma.vmem_to_hbm [thread:$0]  %s990_s26, 256, %s1915_s17, [#allocation4], %s1702_s19, %s1702_s19, %s1703_s1  }
 0x6d0   :  { %1696 = dma.done.wait [#allocation4], 256  }
 0x6d1   :  { %1697 = vsyncadd [#allocation4], 4294967040 }
 0x6d2   :  { %1698 = dma.done.wait [#allocation19], 256  }
 0x6d3   :  { %1699 = vsyncadd [#allocation19], 4294967040 }
 0x6d4   :  { %1014 = vsyncpa [#allocation3], 1 }
 0x6d5   :  { %1015 = vsyncpa [#allocation6], 1 }
 0x6d6   :  { %1016 = vsyncpa [#allocation9], 1 }
 0x6d7   :  { %1017 = vsyncpa [#allocation12], 1 }
 0x6d8   :  { %1018 = vsyncpa [#allocation15], 1 }
 0x6d9   :  { %1019 = vsyncpa [#allocation4], 1 }
 0x6da   :  { %1020 = vsyncpa [#allocation19], 1 }

</bundles_post_ra>
